<compile_context>
chip_gen: v5e
topology: v5e:2x2
jax: 0.10.0
libtpu: 0.0.40
codegen_flags: <defaults>
</compile_context>

<pallas_src>
import functools

import jax
import jax.numpy as jnp
from jax import lax
from jax.experimental import pallas as pl
from jax.experimental.pallas import tpu as pltpu

EPS = 1e-5


# ------------------------------ in-kernel helpers ------------------------------
def _bn_rows(y, gamma, beta):
    """Training-mode batchnorm for y laid out (C, M): stats along axis=1."""
    m_inv = 1.0 / y.shape[1]
    s1 = jnp.sum(y, axis=1, keepdims=True)
    s2 = jnp.sum(y * y, axis=1, keepdims=True)
    mean = s1 * m_inv
    var = jnp.maximum(s2 * m_inv - mean * mean, 0.0)   # clamp f32 cancellation
    scale = gamma * lax.rsqrt(var + EPS)
    shift = beta - mean * scale
    return y * scale + shift                           # one FMA per element


def _lane_roll(x, d):
    """y[:, m] = x[:, (m + d) % M] for a static int d.  Two static lane-axis
    slices + concat keep it portable (Mosaic and interpret mode).
    TODO(synk): switch to pltpu.roll(x, -d, axis=1) (XLU rotate slot) on HW."""
    M = x.shape[1]
    d = d % M
    if d == 0:
        return x
    return jnp.concatenate([x[:, d:], x[:, :d]], axis=1)


def _conv3x3_same(x_cm, w_t, masks, cin, wo):
    """3x3 / stride-1 / pad-1 conv as a 9-tap MXU accumulation.

    x_cm:  (cin, M)          input, channels on sublanes, pixels on lanes
    w_t:   (co_tile, 9*cin)  transposed HWIO weights, column = (kh*3+kw)*cin+ci
    masks: (9, M)            1.0 where the tap's source pixel is in-bounds
    Returns (co_tile, M) f32.  No (9*cin, M) im2col is ever materialised.
    """
    co = w_t.shape[0]
    M = x_cm.shape[1]
    acc = jnp.zeros((co, M), jnp.float32)
    t = 0
    for di in (-1, 0, 1):
        for dj in (-1, 0, 1):
            tap = _lane_roll(x_cm, di * wo + dj)
            if not (di == 0 and dj == 0):              # centre tap needs no mask
                tap = tap * masks[t:t + 1, :]
            w_tap = w_t[:, t * cin:(t + 1) * cin]
            acc = acc + jnp.dot(w_tap, tap, preferred_element_type=jnp.float32)
            t += 1
    return acc


# ----------------------------------- kernels -----------------------------------
def _stage1_kernel(in_kernel_taps, cin, wo, *refs):
    """conv1 + bn1 + relu; output channels tiled over the grid."""
    if in_kernel_taps:                                 # stride == 1
        masks_ref, x_ref, w1_ref, g1_ref, b1_ref, o_ref = refs
        y = _conv3x3_same(x_ref[...], w1_ref[...], masks_ref[...], cin, wo)
    else:                                              # strided conv1: im2col input
        x_ref, w1_ref, g1_ref, b1_ref, o_ref = refs
        y = jnp.dot(w1_ref[...], x_ref[...], preferred_element_type=jnp.float32)
    y = _bn_rows(y, g1_ref[...], b1_ref[...])
    o_ref[...] = jnp.maximum(y, 0.0).astype(o_ref.dtype)


def _stage2_kernel(use_conv1x1, cout, wo,
                   masks_ref, h1_ref, w2_ref, g2_ref, b2_ref, sc_ref, *rest):
    """conv2 + bn2 + shortcut + add + relu; output channels tiled."""
    if use_conv1x1:
        ws_ref, gs_ref, bs_ref, o_ref = rest
    else:
        (o_ref,) = rest
    y = _conv3x3_same(h1_ref[...], w2_ref[...], masks_ref[...], cout, wo)
    y = _bn_rows(y, g2_ref[...], b2_ref[...])
    if use_conv1x1:
        ident = jnp.dot(ws_ref[...], sc_ref[...],
                        preferred_element_type=jnp.float32)
        ident = _bn_rows(ident, gs_ref[...], bs_ref[...])
    else:
        ident = sc_ref[...].astype(jnp.float32)
    o_ref[...] = jnp.maximum(y + ident, 0.0).astype(o_ref.dtype)


def _fused_kernel(in_kernel_taps, use_conv1x1, cin, cout, wo,
                  masks_ref, x1_ref, w1_ref, g1_ref, b1_ref,
                  w2_ref, g2_ref, b2_ref, *rest):
    """Whole residual block in one pallas_call; h1 never touches HBM."""
    if use_conv1x1:
        sc_ref, ws_ref, gs_ref, bs_ref, o_ref = rest
    else:
        (o_ref,) = rest
    masks = masks_ref[...]
    # conv1 + bn1 + relu
    if in_kernel_taps:                                 # stride == 1
        y1 = _conv3x3_same(x1_ref[...], w1_ref[...], masks, cin, wo)
    else:                                              # strided conv1: im2col input
        y1 = jnp.dot(w1_ref[...], x1_ref[...], preferred_element_type=jnp.float32)
    h1 = jnp.maximum(_bn_rows(y1, g1_ref[...], b1_ref[...]), 0.0)
    # conv2 + bn2
    y2 = _conv3x3_same(h1, w2_ref[...], masks, cout, wo)
    y2 = _bn_rows(y2, g2_ref[...], b2_ref[...])
    # shortcut
    if use_conv1x1:
        ident = jnp.dot(ws_ref[...], sc_ref[...],
                        preferred_element_type=jnp.float32)
        ident = _bn_rows(ident, gs_ref[...], bs_ref[...])
    else:                                              # identity => stride==1, Cin==Cout
        ident = x1_ref[...].astype(jnp.float32)
    o_ref[...] = jnp.maximum(y2 + ident, 0.0).astype(o_ref.dtype)


# --------------------------- wrapper-side layout helpers ---------------------------
def _tap_masks(n, ho, wo, dtype):
    """(9, M) validity masks for the 9 taps of a 3x3/pad-1 conv (wrapper-side,
    computed once; replaces in-kernel iota / mod / where per channel tile)."""
    m = jnp.arange(n * ho * wo, dtype=jnp.int32)
    j = m % wo
    i = (m // wo) % ho
    rows = []
    for di in (-1, 0, 1):
        for dj in (-1, 0, 1):
            ok = (i + di >= 0) & (i + di < ho) & (j + dj >= 0) & (j + dj < wo)
            rows.append(ok.astype(dtype))
    return jnp.stack(rows, axis=0)


def _im2col_T(x_nhwc, stride, ho, wo, dtype):
    """Transposed im2col of a 3x3/pad-1 *strided* conv: (9*Cin, N*Ho*Wo).
    Only used for the downsampling conv1 (stride > 1)."""
    n, h, w, cin = x_nhwc.shape
    xp = jnp.pad(x_nhwc, ((0, 0), (1, 1), (1, 1), (0, 0)))
    taps = [xp[:, kh:kh + stride * ho:stride, kw:kw + stride * wo:stride, :]
            for kh in range(3) for kw in range(3)]
    col = jnp.concatenate(taps, axis=-1)               # (N, Ho, Wo, 9*Cin)
    return col.reshape(n * ho * wo, 9 * cin).T.astype(dtype)


def _pick_channel_tile(cout):
    """Channel tile for the two-call path: >=2 grid steps when possible (so the
    "parallel" axis can shard across the two v7x TensorCores), <=256 rows (one
    full v6e/v7x MXU pass), and always a multiple of 8 sublanes (or full)."""
    if cout > 256 and cout % 256 == 0:
        return 256
    if cout > 128 and cout % 128 == 0:
        return 128
    half = cout // 2
    if half >= 8 and half % 8 == 0 and cout % half == 0:
        return half
    return cout


def _vmem_limit(blocks_bytes, temps_bytes):
    """Scoped-VMEM request: double-buffered blocks + in-register temporaries +
    headroom, capped at the smallest physical VMEM (v7x: 64 MiB)."""
    need = 2 * blocks_bytes + temps_bytes + (4 << 20)
    return int(max(32 << 20, min(need, 64 << 20)))


# ------------------------------------ wrapper ------------------------------------
@functools.partial(jax.jit, static_argnames=("use_conv1x1", "stride", "fuse"))
def residual_block(x_nchw, params, *, use_conv1x1=False, stride=1, fuse=None):
    """Forward pass of the ResidualBlock.  x_nchw: (N, Cin, H, W) float32."""
    n, cin, h, w = x_nchw.shape
    cout = params["w1"].shape[-1]
    ho = (h - 1) // stride + 1
    wo = (w - 1) // stride + 1
    m = n * ho * wo
    f32 = jnp.float32
    if not use_conv1x1:
        assert stride == 1 and cin == cout, "identity shortcut needs matching shapes"

    # Layout plumbing: channels -> sublanes, N*Ho*Wo pixels -> lanes (lane-dense).
    x_nhwc = jnp.transpose(x_nchw, (0, 2, 3, 1)).astype(f32)
    masks = _tap_masks(n, ho, wo, f32)                                 # (9, M)
    in_kernel_taps = stride == 1
    if in_kernel_taps:
        x1 = x_nhwc.reshape(m, cin).T                                  # (Cin, M)
    else:
        x1 = _im2col_T(x_nhwc, stride, ho, wo, f32)                    # (9Cin, M)
    w1t = params["w1"].reshape(9 * cin, cout).T.astype(f32)            # (Cout, 9Cin)
    w2t = params["w2"].reshape(9 * cout, cout).T.astype(f32)           # (Cout, 9Cout)
    col = lambda v: v.reshape(-1, 1).astype(f32)
    g1, b1 = col(params["g1"]), col(params["be1"])
    g2, b2 = col(params["g2"]), col(params["be2"])
    if use_conv1x1:
        x_sc = x_nhwc[:, ::stride, ::stride, :].reshape(m, cin).T      # (Cin, M)
        wst = params["ws"].T.astype(f32)                               # (Cout, Cin)
        gs, bs = col(params["gs"]), col(params["bes"])

    inv = lambda a: pl.BlockSpec(a.shape, lambda c: (0, 0))            # grid-invariant

    # VMEM budget (BlockSpec inputs are double-buffered) and fuse heuristic.
    base_bytes = 4 * (masks.size + x1.size + w1t.size + w2t.size + 2 * cout
                      + ((x_sc.size + wst.size + 2 * cout) if use_conv1x1 else 0)
                      + cout * m)
    temps_bytes = 6 * cout * m * 4                  # h1 / acc / taps f32 temporaries
    if fuse is None:
        fuse = (2 * base_bytes + temps_bytes) <= (16 << 20)
    vmem_bytes = _vmem_limit(base_bytes, temps_bytes)

    if fuse:
        # -------- one fused pallas_call: conv1+bn1+relu+conv2+bn2+shortcut+relu
        inputs = [masks, x1, w1t, g1, b1, w2t, g2, b2]
        if use_conv1x1:
            inputs += [x_sc, wst, gs, bs]
        outt = pl.pallas_call(
            functools.partial(_fused_kernel, in_kernel_taps, use_conv1x1,
                              cin, cout, wo),
            grid=(1,),
            in_specs=[inv(a) for a in inputs],
            out_specs=pl.BlockSpec((cout, m), lambda c: (0, 0)),
            out_shape=jax.ShapeDtypeStruct((cout, m), x_nchw.dtype),
            compiler_params=pltpu.CompilerParams(
                dimension_semantics=("arbitrary",),
                vmem_limit_bytes=vmem_bytes),
        )(*inputs)
        return outt.reshape(cout, n, ho, wo).transpose(1, 0, 2, 3)

    # -------- two channel-tiled pallas_calls (larger Cout).
    # Channel tiles keep the full N*Ho*Wo extent, so BN stats stay exact; the
    # grid axis is "parallel" (independent output channels).
    # (Grid-invariant operands could use pipeline_mode=pl.Buffered(1) to halve
    #  their VMEM; left at the default here.)
    tc = _pick_channel_tile(cout)
    n_tiles = cout // tc
    ctile = lambda ncols: pl.BlockSpec((tc, ncols), lambda c: (c, 0))
    cparams = pltpu.CompilerParams(dimension_semantics=("parallel",),
                                   vmem_limit_bytes=vmem_bytes)

    # stage 1: conv1 + bn1 + relu
    if in_kernel_taps:
        s1_in = [masks, x1, w1t, g1, b1]
        s1_specs = [inv(masks), inv(x1), ctile(9 * cin), ctile(1), ctile(1)]
    else:
        s1_in = [x1, w1t, g1, b1]
        s1_specs = [inv(x1), ctile(9 * cin), ctile(1), ctile(1)]
    h1 = pl.pallas_call(
        functools.partial(_stage1_kernel, in_kernel_taps, cin, wo),
        grid=(n_tiles,),
        in_specs=s1_specs,
        out_specs=pl.BlockSpec((tc, m), lambda c: (c, 0)),
        out_shape=jax.ShapeDtypeStruct((cout, m), f32),
        compiler_params=cparams,
    )(*s1_in)

    # stage 2: conv2 + bn2 + shortcut + add + relu
    s2_in = [masks, h1, w2t, g2, b2]
    s2_specs = [inv(masks), inv(h1), ctile(9 * cout), ctile(1), ctile(1)]
    if use_conv1x1:
        s2_in += [x_sc, wst, gs, bs]
        s2_specs += [inv(x_sc), ctile(cin), ctile(1), ctile(1)]
    else:
        s2_in += [x1]                      # identity: Cin == Cout, stride == 1
        s2_specs += [ctile(m)]
    outt = pl.pallas_call(
        functools.partial(_stage2_kernel, use_conv1x1, cout, wo),
        grid=(n_tiles,),
        in_specs=s2_specs,
        out_specs=pl.BlockSpec((tc, m), lambda c: (c, 0)),
        out_shape=jax.ShapeDtypeStruct((cout, m), x_nchw.dtype),
        compiler_params=cparams,
    )(*s2_in)
    return outt.reshape(cout, n, ho, wo).transpose(1, 0, 2, 3)


# ------------------------------ pure-JAX reference ------------------------------
def ref_residual_block(x_nchw, p, *, use_conv1x1=False, stride=1):
    def conv(x, w, b, s, pad):
        y = lax.conv_general_dilated(
            x, w, (s, s), ((pad, pad), (pad, pad)),
            dimension_numbers=("NCHW", "HWIO", "NCHW"),
            precision=lax.Precision.HIGHEST)
        return y + b[None, :, None, None]

    def bn(y, g, be):
        mean = y.mean(axis=(0, 2, 3), keepdims=True)
        var = ((y - mean) ** 2).mean(axis=(0, 2, 3), keepdims=True)
        return ((y - mean) * lax.rsqrt(var + EPS) * g[None, :, None, None]
                + be[None, :, None, None])

    h = jax.nn.relu(bn(conv(x_nchw, p["w1"], p["b1"], stride, 1), p["g1"], p["be1"]))
    h = bn(conv(h, p["w2"], p["b2"], 1, 1), p["g2"], p["be2"])
    if use_conv1x1:
        ws4 = p["ws"].reshape(1, 1, *p["ws"].shape)
        ident = bn(conv(x_nchw, ws4, p["bs"], stride, 0), p["gs"], p["bes"])
    else:
        ident = x_nchw
    return jax.nn.relu(h + ident)


def init_params(key, cin, cout, use_conv1x1):
    ks = jax.random.split(key, 12)
    p = {
        "w1": 0.1 * jax.random.normal(ks[0], (3, 3, cin, cout), jnp.float32),
        "b1": 0.1 * jax.random.normal(ks[1], (cout,), jnp.float32),
        "g1": 1.0 + 0.1 * jax.random.normal(ks[2], (cout,), jnp.float32),
        "be1": 0.1 * jax.random.normal(ks[3], (cout,), jnp.float32),
        "w2": 0.1 * jax.random.normal(ks[4], (3, 3, cout, cout), jnp.float32),
        "b2": 0.1 * jax.random.normal(ks[5], (cout,), jnp.float32),
        "g2": 1.0 + 0.1 * jax.random.normal(ks[6], (cout,), jnp.float32),
        "be2": 0.1 * jax.random.normal(ks[7], (cout,), jnp.float32),
    }
    if use_conv1x1:
        p.update({
            "ws": 0.1 * jax.random.normal(ks[8], (cin, cout), jnp.float32),
            "bs": 0.1 * jax.random.normal(ks[9], (cout,), jnp.float32),
            "gs": 1.0 + 0.1 * jax.random.normal(ks[10], (cout,), jnp.float32),
            "bes": 0.1 * jax.random.normal(ks[11], (cout,), jnp.float32),
        })
    return p


def _check(name, out, ref, tol):
    err = float(jnp.max(jnp.abs(out - ref)) / (jnp.max(jnp.abs(ref)) + 1e-6))
    assert err < tol, f"{name} mismatch: normalized max err {err:.3e} >= {tol}"


if __name__ == "__main__":
    key = jax.random.PRNGKey(0)
    kx, kp1, kp2, kp3 = jax.random.split(key, 4)
    x = jax.random.normal(kx, (2, 4, 16, 16), jnp.float32)   # NCHW, like PyTorch

    # Config A: identity shortcut (in=out=4, stride=1).
    pA = init_params(kp1, 4, 4, use_conv1x1=False)
    refA = ref_residual_block(x, pA, use_conv1x1=False, stride=1)
    for fuse in (None, False):                  # fused path and two-call path
        outA = residual_block(x, pA, use_conv1x1=False, stride=1, fuse=fuse)
        jax.block_until_ready(outA)
        assert outA.shape == (2, 4, 16, 16)
        _check(f"config A (fuse={fuse})", outA, refA, 1e-3)

    # Config B: 1x1-conv + BN shortcut (in=4, out=8, stride=1).
    pB = init_params(kp2, 4, 8, use_conv1x1=True)
    refB = ref_residual_block(x, pB, use_conv1x1=True, stride=1)
    for fuse in (None, False):
        outB = residual_block(x, pB, use_conv1x1=True, stride=1, fuse=fuse)
        jax.block_until_ready(outB)
        assert outB.shape == (2, 8, 16, 16)
        _check(f"config B (fuse={fuse})", outB, refB, 1e-3)

    # Config C: downsampling block, 1x1-conv + BN shortcut, stride=2.
    pC = init_params(kp3, 4, 8, use_conv1x1=True)
    refC = ref_residual_block(x, pC, use_conv1x1=True, stride=2)
    for fuse in (None, False):
        outC = residual_block(x, pC, use_conv1x1=True, stride=2, fuse=fuse)
        jax.block_until_ready(outC)
        assert outC.shape == (2, 8, 8, 8)
        _check(f"config C (fuse={fuse})", outC, refC, 1e-3)

    print("KERNEL_OK")
</pallas_src>

<mosaic_0001>
module attributes {stable_mosaic.version = 11 : i64} {
  func.func @_fused_kernel(%arg0: i32, %arg1: memref<9x512xf32, #tpu.memory_space<vmem>>, %arg2: memref<4x512xf32, #tpu.memory_space<vmem>>, %arg3: memref<4x36xf32, #tpu.memory_space<vmem>>, %arg4: memref<4x1xf32, #tpu.memory_space<vmem>>, %arg5: memref<4x1xf32, #tpu.memory_space<vmem>>, %arg6: memref<4x36xf32, #tpu.memory_space<vmem>>, %arg7: memref<4x1xf32, #tpu.memory_space<vmem>>, %arg8: memref<4x1xf32, #tpu.memory_space<vmem>>, %arg9: memref<4x512xf32, #tpu.memory_space<vmem>>) attributes {dimension_semantics = [#tpu.dimension_semantics<arbitrary>], iteration_bounds = array<i64: 1>, scalar_prefetch = 0 : i64, scratch_operands = 0 : i64, tpu.core_type = #tpu.core_type<tc>, window_params = [{pipeline_mode = #tpu.pipeline_mode<synchronous>, transform_indices = @transform_0, window_bounds = array<i64: 9, 512>}, {pipeline_mode = #tpu.pipeline_mode<synchronous>, transform_indices = @transform_1, window_bounds = array<i64: 4, 512>}, {pipeline_mode = #tpu.pipeline_mode<synchronous>, transform_indices = @transform_2, window_bounds = array<i64: 4, 36>}, {pipeline_mode = #tpu.pipeline_mode<synchronous>, transform_indices = @transform_3, window_bounds = array<i64: 4, 1>}, {pipeline_mode = #tpu.pipeline_mode<synchronous>, transform_indices = @transform_4, window_bounds = array<i64: 4, 1>}, {pipeline_mode = #tpu.pipeline_mode<synchronous>, transform_indices = @transform_5, window_bounds = array<i64: 4, 36>}, {pipeline_mode = #tpu.pipeline_mode<synchronous>, transform_indices = @transform_6, window_bounds = array<i64: 4, 1>}, {pipeline_mode = #tpu.pipeline_mode<synchronous>, transform_indices = @transform_7, window_bounds = array<i64: 4, 1>}, {pipeline_mode = #tpu.pipeline_mode<synchronous>, transform_indices = @transform_8, window_bounds = array<i64: 4, 512>}]} {
    %c0 = arith.constant 0 : index
    %c0_0 = arith.constant 0 : index
    %0 = vector.load %arg1[%c0, %c0_0] : memref<9x512xf32, #tpu.memory_space<vmem>>, vector<9x512xf32>
    %c0_1 = arith.constant 0 : index
    %c0_2 = arith.constant 0 : index
    %1 = vector.load %arg2[%c0_1, %c0_2] : memref<4x512xf32, #tpu.memory_space<vmem>>, vector<4x512xf32>
    %c0_3 = arith.constant 0 : index
    %c0_4 = arith.constant 0 : index
    %2 = vector.load %arg3[%c0_3, %c0_4] : memref<4x36xf32, #tpu.memory_space<vmem>>, vector<4x36xf32>
    %cst = arith.constant 0.000000e+00 : f32
    %3 = vector.broadcast %cst : f32 to vector<4x512xf32>
    %4 = vector.extract_strided_slice %1 {offsets = [0, 495], sizes = [4, 17], strides = [1, 1]} : vector<4x512xf32> to vector<4x17xf32>
    %5 = vector.extract_strided_slice %1 {offsets = [0, 0], sizes = [4, 495], strides = [1, 1]} : vector<4x512xf32> to vector<4x495xf32>
    %6 = tpu.concatenate %4, %5 in 1 : vector<4x17xf32>, vector<4x495xf32> -> vector<4x512xf32>
    %7 = vector.extract_strided_slice %0 {offsets = [0, 0], sizes = [1, 512], strides = [1, 1]} : vector<9x512xf32> to vector<1x512xf32>
    %8 = vector.broadcast %7 : vector<1x512xf32> to vector<4x512xf32>
    %9 = arith.mulf %6, %8 : vector<4x512xf32>
    %10 = vector.extract_strided_slice %2 {offsets = [0, 0], sizes = [4, 4], strides = [1, 1]} : vector<4x36xf32> to vector<4x4xf32>
    %cst_5 = arith.constant dense<0.000000e+00> : vector<4x512xf32>
    %11 = tpu.matmul %10, %9, %cst_5 {dimension_numbers = #tpu.dot_dimension_numbers<[1], [0], [0], [1], [0, 0, 1, 1], [], []>} : vector<4x4xf32>, vector<4x512xf32>, vector<4x512xf32> -> vector<4x512xf32>
    %12 = arith.addf %3, %11 : vector<4x512xf32>
    %13 = vector.extract_strided_slice %1 {offsets = [0, 496], sizes = [4, 16], strides = [1, 1]} : vector<4x512xf32> to vector<4x16xf32>
    %14 = vector.extract_strided_slice %1 {offsets = [0, 0], sizes = [4, 496], strides = [1, 1]} : vector<4x512xf32> to vector<4x496xf32>
    %15 = tpu.concatenate %13, %14 in 1 : vector<4x16xf32>, vector<4x496xf32> -> vector<4x512xf32>
    %16 = vector.extract_strided_slice %0 {offsets = [1, 0], sizes = [1, 512], strides = [1, 1]} : vector<9x512xf32> to vector<1x512xf32>
    %17 = vector.broadcast %16 : vector<1x512xf32> to vector<4x512xf32>
    %18 = arith.mulf %15, %17 : vector<4x512xf32>
    %19 = vector.extract_strided_slice %2 {offsets = [0, 4], sizes = [4, 4], strides = [1, 1]} : vector<4x36xf32> to vector<4x4xf32>
    %cst_6 = arith.constant dense<0.000000e+00> : vector<4x512xf32>
    %20 = tpu.matmul %19, %18, %cst_6 {dimension_numbers = #tpu.dot_dimension_numbers<[1], [0], [0], [1], [0, 0, 1, 1], [], []>} : vector<4x4xf32>, vector<4x512xf32>, vector<4x512xf32> -> vector<4x512xf32>
    %21 = arith.addf %12, %20 : vector<4x512xf32>
    %22 = vector.extract_strided_slice %1 {offsets = [0, 497], sizes = [4, 15], strides = [1, 1]} : vector<4x512xf32> to vector<4x15xf32>
    %23 = vector.extract_strided_slice %1 {offsets = [0, 0], sizes = [4, 497], strides = [1, 1]} : vector<4x512xf32> to vector<4x497xf32>
    %24 = tpu.concatenate %22, %23 in 1 : vector<4x15xf32>, vector<4x497xf32> -> vector<4x512xf32>
    %25 = vector.extract_strided_slice %0 {offsets = [2, 0], sizes = [1, 512], strides = [1, 1]} : vector<9x512xf32> to vector<1x512xf32>
    %26 = vector.broadcast %25 : vector<1x512xf32> to vector<4x512xf32>
    %27 = arith.mulf %24, %26 : vector<4x512xf32>
    %28 = vector.extract_strided_slice %2 {offsets = [0, 8], sizes = [4, 4], strides = [1, 1]} : vector<4x36xf32> to vector<4x4xf32>
    %cst_7 = arith.constant dense<0.000000e+00> : vector<4x512xf32>
    %29 = tpu.matmul %28, %27, %cst_7 {dimension_numbers = #tpu.dot_dimension_numbers<[1], [0], [0], [1], [0, 0, 1, 1], [], []>} : vector<4x4xf32>, vector<4x512xf32>, vector<4x512xf32> -> vector<4x512xf32>
    %30 = arith.addf %21, %29 : vector<4x512xf32>
    %31 = vector.extract_strided_slice %1 {offsets = [0, 511], sizes = [4, 1], strides = [1, 1]} : vector<4x512xf32> to vector<4x1xf32>
    %32 = vector.extract_strided_slice %1 {offsets = [0, 0], sizes = [4, 511], strides = [1, 1]} : vector<4x512xf32> to vector<4x511xf32>
    %33 = tpu.concatenate %31, %32 in 1 : vector<4x1xf32>, vector<4x511xf32> -> vector<4x512xf32>
    %34 = vector.extract_strided_slice %0 {offsets = [3, 0], sizes = [1, 512], strides = [1, 1]} : vector<9x512xf32> to vector<1x512xf32>
    %35 = vector.broadcast %34 : vector<1x512xf32> to vector<4x512xf32>
    %36 = arith.mulf %33, %35 : vector<4x512xf32>
    %37 = vector.extract_strided_slice %2 {offsets = [0, 12], sizes = [4, 4], strides = [1, 1]} : vector<4x36xf32> to vector<4x4xf32>
    %cst_8 = arith.constant dense<0.000000e+00> : vector<4x512xf32>
    %38 = tpu.matmul %37, %36, %cst_8 {dimension_numbers = #tpu.dot_dimension_numbers<[1], [0], [0], [1], [0, 0, 1, 1], [], []>} : vector<4x4xf32>, vector<4x512xf32>, vector<4x512xf32> -> vector<4x512xf32>
    %39 = arith.addf %30, %38 : vector<4x512xf32>
    %40 = vector.extract_strided_slice %2 {offsets = [0, 16], sizes = [4, 4], strides = [1, 1]} : vector<4x36xf32> to vector<4x4xf32>
    %cst_9 = arith.constant dense<0.000000e+00> : vector<4x512xf32>
    %41 = tpu.matmul %40, %1, %cst_9 {dimension_numbers = #tpu.dot_dimension_numbers<[1], [0], [0], [1], [0, 0, 1, 1], [], []>} : vector<4x4xf32>, vector<4x512xf32>, vector<4x512xf32> -> vector<4x512xf32>
    %42 = arith.addf %39, %41 : vector<4x512xf32>
    %43 = vector.extract_strided_slice %1 {offsets = [0, 1], sizes = [4, 511], strides = [1, 1]} : vector<4x512xf32> to vector<4x511xf32>
    %44 = vector.extract_strided_slice %1 {offsets = [0, 0], sizes = [4, 1], strides = [1, 1]} : vector<4x512xf32> to vector<4x1xf32>
    %45 = tpu.concatenate %43, %44 in 1 : vector<4x511xf32>, vector<4x1xf32> -> vector<4x512xf32>
    %46 = vector.extract_strided_slice %0 {offsets = [5, 0], sizes = [1, 512], strides = [1, 1]} : vector<9x512xf32> to vector<1x512xf32>
    %47 = vector.broadcast %46 : vector<1x512xf32> to vector<4x512xf32>
    %48 = arith.mulf %45, %47 : vector<4x512xf32>
    %49 = vector.extract_strided_slice %2 {offsets = [0, 20], sizes = [4, 4], strides = [1, 1]} : vector<4x36xf32> to vector<4x4xf32>
    %cst_10 = arith.constant dense<0.000000e+00> : vector<4x512xf32>
    %50 = tpu.matmul %49, %48, %cst_10 {dimension_numbers = #tpu.dot_dimension_numbers<[1], [0], [0], [1], [0, 0, 1, 1], [], []>} : vector<4x4xf32>, vector<4x512xf32>, vector<4x512xf32> -> vector<4x512xf32>
    %51 = arith.addf %42, %50 : vector<4x512xf32>
    %52 = vector.extract_strided_slice %1 {offsets = [0, 15], sizes = [4, 497], strides = [1, 1]} : vector<4x512xf32> to vector<4x497xf32>
    %53 = vector.extract_strided_slice %1 {offsets = [0, 0], sizes = [4, 15], strides = [1, 1]} : vector<4x512xf32> to vector<4x15xf32>
    %54 = tpu.concatenate %52, %53 in 1 : vector<4x497xf32>, vector<4x15xf32> -> vector<4x512xf32>
    %55 = vector.extract_strided_slice %0 {offsets = [6, 0], sizes = [1, 512], strides = [1, 1]} : vector<9x512xf32> to vector<1x512xf32>
    %56 = vector.broadcast %55 : vector<1x512xf32> to vector<4x512xf32>
    %57 = arith.mulf %54, %56 : vector<4x512xf32>
    %58 = vector.extract_strided_slice %2 {offsets = [0, 24], sizes = [4, 4], strides = [1, 1]} : vector<4x36xf32> to vector<4x4xf32>
    %cst_11 = arith.constant dense<0.000000e+00> : vector<4x512xf32>
    %59 = tpu.matmul %58, %57, %cst_11 {dimension_numbers = #tpu.dot_dimension_numbers<[1], [0], [0], [1], [0, 0, 1, 1], [], []>} : vector<4x4xf32>, vector<4x512xf32>, vector<4x512xf32> -> vector<4x512xf32>
    %60 = arith.addf %51, %59 : vector<4x512xf32>
    %61 = vector.extract_strided_slice %1 {offsets = [0, 16], sizes = [4, 496], strides = [1, 1]} : vector<4x512xf32> to vector<4x496xf32>
    %62 = vector.extract_strided_slice %1 {offsets = [0, 0], sizes = [4, 16], strides = [1, 1]} : vector<4x512xf32> to vector<4x16xf32>
    %63 = tpu.concatenate %61, %62 in 1 : vector<4x496xf32>, vector<4x16xf32> -> vector<4x512xf32>
    %64 = vector.extract_strided_slice %0 {offsets = [7, 0], sizes = [1, 512], strides = [1, 1]} : vector<9x512xf32> to vector<1x512xf32>
    %65 = vector.broadcast %64 : vector<1x512xf32> to vector<4x512xf32>
    %66 = arith.mulf %63, %65 : vector<4x512xf32>
    %67 = vector.extract_strided_slice %2 {offsets = [0, 28], sizes = [4, 4], strides = [1, 1]} : vector<4x36xf32> to vector<4x4xf32>
    %cst_12 = arith.constant dense<0.000000e+00> : vector<4x512xf32>
    %68 = tpu.matmul %67, %66, %cst_12 {dimension_numbers = #tpu.dot_dimension_numbers<[1], [0], [0], [1], [0, 0, 1, 1], [], []>} : vector<4x4xf32>, vector<4x512xf32>, vector<4x512xf32> -> vector<4x512xf32>
    %69 = arith.addf %60, %68 : vector<4x512xf32>
    %70 = vector.extract_strided_slice %1 {offsets = [0, 17], sizes = [4, 495], strides = [1, 1]} : vector<4x512xf32> to vector<4x495xf32>
    %71 = vector.extract_strided_slice %1 {offsets = [0, 0], sizes = [4, 17], strides = [1, 1]} : vector<4x512xf32> to vector<4x17xf32>
    %72 = tpu.concatenate %70, %71 in 1 : vector<4x495xf32>, vector<4x17xf32> -> vector<4x512xf32>
    %73 = vector.extract_strided_slice %0 {offsets = [8, 0], sizes = [1, 512], strides = [1, 1]} : vector<9x512xf32> to vector<1x512xf32>
    %74 = vector.broadcast %73 : vector<1x512xf32> to vector<4x512xf32>
    %75 = arith.mulf %72, %74 : vector<4x512xf32>
    %76 = vector.extract_strided_slice %2 {offsets = [0, 32], sizes = [4, 4], strides = [1, 1]} : vector<4x36xf32> to vector<4x4xf32>
    %cst_13 = arith.constant dense<0.000000e+00> : vector<4x512xf32>
    %77 = tpu.matmul %76, %75, %cst_13 {dimension_numbers = #tpu.dot_dimension_numbers<[1], [0], [0], [1], [0, 0, 1, 1], [], []>} : vector<4x4xf32>, vector<4x512xf32>, vector<4x512xf32> -> vector<4x512xf32>
    %78 = arith.addf %69, %77 : vector<4x512xf32>
    %c0_14 = arith.constant 0 : index
    %c0_15 = arith.constant 0 : index
    %79 = vector.load %arg4[%c0_14, %c0_15] : memref<4x1xf32, #tpu.memory_space<vmem>>, vector<4x1xf32>
    %c0_16 = arith.constant 0 : index
    %c0_17 = arith.constant 0 : index
    %80 = vector.load %arg5[%c0_16, %c0_17] : memref<4x1xf32, #tpu.memory_space<vmem>>, vector<4x1xf32>
    %cst_18 = arith.constant dense<0.000000e+00> : vector<4xf32>
    %81 = vector.multi_reduction <add>, %78, %cst_18 [1] : vector<4x512xf32> to vector<4xf32>
    %82 = vector.shape_cast %81 : vector<4xf32> to vector<4x1xf32>
    %83 = arith.mulf %78, %78 : vector<4x512xf32>
    %cst_19 = arith.constant dense<0.000000e+00> : vector<4xf32>
    %84 = vector.multi_reduction <add>, %83, %cst_19 [1] : vector<4x512xf32> to vector<4xf32>
    %85 = vector.shape_cast %84 : vector<4xf32> to vector<4x1xf32>
    %cst_20 = arith.constant 0.001953125 : f32
    %86 = vector.broadcast %cst_20 : f32 to vector<4x1xf32>
    %87 = arith.mulf %82, %86 : vector<4x1xf32>
    %cst_21 = arith.constant 0.001953125 : f32
    %88 = vector.broadcast %cst_21 : f32 to vector<4x1xf32>
    %89 = arith.mulf %85, %88 : vector<4x1xf32>
    %90 = arith.mulf %87, %87 : vector<4x1xf32>
    %91 = arith.subf %89, %90 : vector<4x1xf32>
    %cst_22 = arith.constant 0.000000e+00 : f32
    %92 = vector.broadcast %cst_22 : f32 to vector<4x1xf32>
    %93 = arith.maximumf %91, %92 : vector<4x1xf32>
    %cst_23 = arith.constant 9.99999974E-6 : f32
    %94 = vector.broadcast %cst_23 : f32 to vector<4x1xf32>
    %95 = arith.addf %93, %94 : vector<4x1xf32>
    %96 = math.rsqrt %95 : vector<4x1xf32>
    %97 = arith.mulf %79, %96 : vector<4x1xf32>
    %98 = arith.mulf %87, %97 : vector<4x1xf32>
    %99 = arith.subf %80, %98 : vector<4x1xf32>
    %100 = vector.broadcast %97 : vector<4x1xf32> to vector<4x512xf32>
    %101 = arith.mulf %78, %100 : vector<4x512xf32>
    %102 = vector.broadcast %99 : vector<4x1xf32> to vector<4x512xf32>
    %103 = arith.addf %101, %102 : vector<4x512xf32>
    %cst_24 = arith.constant 0.000000e+00 : f32
    %104 = vector.broadcast %cst_24 : f32 to vector<4x512xf32>
    %105 = arith.maximumf %103, %104 : vector<4x512xf32>
    %c0_25 = arith.constant 0 : index
    %c0_26 = arith.constant 0 : index
    %106 = vector.load %arg6[%c0_25, %c0_26] : memref<4x36xf32, #tpu.memory_space<vmem>>, vector<4x36xf32>
    %cst_27 = arith.constant 0.000000e+00 : f32
    %107 = vector.broadcast %cst_27 : f32 to vector<4x512xf32>
    %108 = vector.extract_strided_slice %105 {offsets = [0, 495], sizes = [4, 17], strides = [1, 1]} : vector<4x512xf32> to vector<4x17xf32>
    %109 = vector.extract_strided_slice %105 {offsets = [0, 0], sizes = [4, 495], strides = [1, 1]} : vector<4x512xf32> to vector<4x495xf32>
    %110 = tpu.concatenate %108, %109 in 1 : vector<4x17xf32>, vector<4x495xf32> -> vector<4x512xf32>
    %111 = vector.extract_strided_slice %0 {offsets = [0, 0], sizes = [1, 512], strides = [1, 1]} : vector<9x512xf32> to vector<1x512xf32>
    %112 = vector.broadcast %111 : vector<1x512xf32> to vector<4x512xf32>
    %113 = arith.mulf %110, %112 : vector<4x512xf32>
    %114 = vector.extract_strided_slice %106 {offsets = [0, 0], sizes = [4, 4], strides = [1, 1]} : vector<4x36xf32> to vector<4x4xf32>
    %cst_28 = arith.constant dense<0.000000e+00> : vector<4x512xf32>
    %115 = tpu.matmul %114, %113, %cst_28 {dimension_numbers = #tpu.dot_dimension_numbers<[1], [0], [0], [1], [0, 0, 1, 1], [], []>} : vector<4x4xf32>, vector<4x512xf32>, vector<4x512xf32> -> vector<4x512xf32>
    %116 = arith.addf %107, %115 : vector<4x512xf32>
    %117 = vector.extract_strided_slice %105 {offsets = [0, 496], sizes = [4, 16], strides = [1, 1]} : vector<4x512xf32> to vector<4x16xf32>
    %118 = vector.extract_strided_slice %105 {offsets = [0, 0], sizes = [4, 496], strides = [1, 1]} : vector<4x512xf32> to vector<4x496xf32>
    %119 = tpu.concatenate %117, %118 in 1 : vector<4x16xf32>, vector<4x496xf32> -> vector<4x512xf32>
    %120 = vector.extract_strided_slice %0 {offsets = [1, 0], sizes = [1, 512], strides = [1, 1]} : vector<9x512xf32> to vector<1x512xf32>
    %121 = vector.broadcast %120 : vector<1x512xf32> to vector<4x512xf32>
    %122 = arith.mulf %119, %121 : vector<4x512xf32>
    %123 = vector.extract_strided_slice %106 {offsets = [0, 4], sizes = [4, 4], strides = [1, 1]} : vector<4x36xf32> to vector<4x4xf32>
    %cst_29 = arith.constant dense<0.000000e+00> : vector<4x512xf32>
    %124 = tpu.matmul %123, %122, %cst_29 {dimension_numbers = #tpu.dot_dimension_numbers<[1], [0], [0], [1], [0, 0, 1, 1], [], []>} : vector<4x4xf32>, vector<4x512xf32>, vector<4x512xf32> -> vector<4x512xf32>
    %125 = arith.addf %116, %124 : vector<4x512xf32>
    %126 = vector.extract_strided_slice %105 {offsets = [0, 497], sizes = [4, 15], strides = [1, 1]} : vector<4x512xf32> to vector<4x15xf32>
    %127 = vector.extract_strided_slice %105 {offsets = [0, 0], sizes = [4, 497], strides = [1, 1]} : vector<4x512xf32> to vector<4x497xf32>
    %128 = tpu.concatenate %126, %127 in 1 : vector<4x15xf32>, vector<4x497xf32> -> vector<4x512xf32>
    %129 = vector.extract_strided_slice %0 {offsets = [2, 0], sizes = [1, 512], strides = [1, 1]} : vector<9x512xf32> to vector<1x512xf32>
    %130 = vector.broadcast %129 : vector<1x512xf32> to vector<4x512xf32>
    %131 = arith.mulf %128, %130 : vector<4x512xf32>
    %132 = vector.extract_strided_slice %106 {offsets = [0, 8], sizes = [4, 4], strides = [1, 1]} : vector<4x36xf32> to vector<4x4xf32>
    %cst_30 = arith.constant dense<0.000000e+00> : vector<4x512xf32>
    %133 = tpu.matmul %132, %131, %cst_30 {dimension_numbers = #tpu.dot_dimension_numbers<[1], [0], [0], [1], [0, 0, 1, 1], [], []>} : vector<4x4xf32>, vector<4x512xf32>, vector<4x512xf32> -> vector<4x512xf32>
    %134 = arith.addf %125, %133 : vector<4x512xf32>
    %135 = vector.extract_strided_slice %105 {offsets = [0, 511], sizes = [4, 1], strides = [1, 1]} : vector<4x512xf32> to vector<4x1xf32>
    %136 = vector.extract_strided_slice %105 {offsets = [0, 0], sizes = [4, 511], strides = [1, 1]} : vector<4x512xf32> to vector<4x511xf32>
    %137 = tpu.concatenate %135, %136 in 1 : vector<4x1xf32>, vector<4x511xf32> -> vector<4x512xf32>
    %138 = vector.extract_strided_slice %0 {offsets = [3, 0], sizes = [1, 512], strides = [1, 1]} : vector<9x512xf32> to vector<1x512xf32>
    %139 = vector.broadcast %138 : vector<1x512xf32> to vector<4x512xf32>
    %140 = arith.mulf %137, %139 : vector<4x512xf32>
    %141 = vector.extract_strided_slice %106 {offsets = [0, 12], sizes = [4, 4], strides = [1, 1]} : vector<4x36xf32> to vector<4x4xf32>
    %cst_31 = arith.constant dense<0.000000e+00> : vector<4x512xf32>
    %142 = tpu.matmul %141, %140, %cst_31 {dimension_numbers = #tpu.dot_dimension_numbers<[1], [0], [0], [1], [0, 0, 1, 1], [], []>} : vector<4x4xf32>, vector<4x512xf32>, vector<4x512xf32> -> vector<4x512xf32>
    %143 = arith.addf %134, %142 : vector<4x512xf32>
    %144 = vector.extract_strided_slice %106 {offsets = [0, 16], sizes = [4, 4], strides = [1, 1]} : vector<4x36xf32> to vector<4x4xf32>
    %cst_32 = arith.constant dense<0.000000e+00> : vector<4x512xf32>
    %145 = tpu.matmul %144, %105, %cst_32 {dimension_numbers = #tpu.dot_dimension_numbers<[1], [0], [0], [1], [0, 0, 1, 1], [], []>} : vector<4x4xf32>, vector<4x512xf32>, vector<4x512xf32> -> vector<4x512xf32>
    %146 = arith.addf %143, %145 : vector<4x512xf32>
    %147 = vector.extract_strided_slice %105 {offsets = [0, 1], sizes = [4, 511], strides = [1, 1]} : vector<4x512xf32> to vector<4x511xf32>
    %148 = vector.extract_strided_slice %105 {offsets = [0, 0], sizes = [4, 1], strides = [1, 1]} : vector<4x512xf32> to vector<4x1xf32>
    %149 = tpu.concatenate %147, %148 in 1 : vector<4x511xf32>, vector<4x1xf32> -> vector<4x512xf32>
    %150 = vector.extract_strided_slice %0 {offsets = [5, 0], sizes = [1, 512], strides = [1, 1]} : vector<9x512xf32> to vector<1x512xf32>
    %151 = vector.broadcast %150 : vector<1x512xf32> to vector<4x512xf32>
    %152 = arith.mulf %149, %151 : vector<4x512xf32>
    %153 = vector.extract_strided_slice %106 {offsets = [0, 20], sizes = [4, 4], strides = [1, 1]} : vector<4x36xf32> to vector<4x4xf32>
    %cst_33 = arith.constant dense<0.000000e+00> : vector<4x512xf32>
    %154 = tpu.matmul %153, %152, %cst_33 {dimension_numbers = #tpu.dot_dimension_numbers<[1], [0], [0], [1], [0, 0, 1, 1], [], []>} : vector<4x4xf32>, vector<4x512xf32>, vector<4x512xf32> -> vector<4x512xf32>
    %155 = arith.addf %146, %154 : vector<4x512xf32>
    %156 = vector.extract_strided_slice %105 {offsets = [0, 15], sizes = [4, 497], strides = [1, 1]} : vector<4x512xf32> to vector<4x497xf32>
    %157 = vector.extract_strided_slice %105 {offsets = [0, 0], sizes = [4, 15], strides = [1, 1]} : vector<4x512xf32> to vector<4x15xf32>
    %158 = tpu.concatenate %156, %157 in 1 : vector<4x497xf32>, vector<4x15xf32> -> vector<4x512xf32>
    %159 = vector.extract_strided_slice %0 {offsets = [6, 0], sizes = [1, 512], strides = [1, 1]} : vector<9x512xf32> to vector<1x512xf32>
    %160 = vector.broadcast %159 : vector<1x512xf32> to vector<4x512xf32>
    %161 = arith.mulf %158, %160 : vector<4x512xf32>
    %162 = vector.extract_strided_slice %106 {offsets = [0, 24], sizes = [4, 4], strides = [1, 1]} : vector<4x36xf32> to vector<4x4xf32>
    %cst_34 = arith.constant dense<0.000000e+00> : vector<4x512xf32>
    %163 = tpu.matmul %162, %161, %cst_34 {dimension_numbers = #tpu.dot_dimension_numbers<[1], [0], [0], [1], [0, 0, 1, 1], [], []>} : vector<4x4xf32>, vector<4x512xf32>, vector<4x512xf32> -> vector<4x512xf32>
    %164 = arith.addf %155, %163 : vector<4x512xf32>
    %165 = vector.extract_strided_slice %105 {offsets = [0, 16], sizes = [4, 496], strides = [1, 1]} : vector<4x512xf32> to vector<4x496xf32>
    %166 = vector.extract_strided_slice %105 {offsets = [0, 0], sizes = [4, 16], strides = [1, 1]} : vector<4x512xf32> to vector<4x16xf32>
    %167 = tpu.concatenate %165, %166 in 1 : vector<4x496xf32>, vector<4x16xf32> -> vector<4x512xf32>
    %168 = vector.extract_strided_slice %0 {offsets = [7, 0], sizes = [1, 512], strides = [1, 1]} : vector<9x512xf32> to vector<1x512xf32>
    %169 = vector.broadcast %168 : vector<1x512xf32> to vector<4x512xf32>
    %170 = arith.mulf %167, %169 : vector<4x512xf32>
    %171 = vector.extract_strided_slice %106 {offsets = [0, 28], sizes = [4, 4], strides = [1, 1]} : vector<4x36xf32> to vector<4x4xf32>
    %cst_35 = arith.constant dense<0.000000e+00> : vector<4x512xf32>
    %172 = tpu.matmul %171, %170, %cst_35 {dimension_numbers = #tpu.dot_dimension_numbers<[1], [0], [0], [1], [0, 0, 1, 1], [], []>} : vector<4x4xf32>, vector<4x512xf32>, vector<4x512xf32> -> vector<4x512xf32>
    %173 = arith.addf %164, %172 : vector<4x512xf32>
    %174 = vector.extract_strided_slice %105 {offsets = [0, 17], sizes = [4, 495], strides = [1, 1]} : vector<4x512xf32> to vector<4x495xf32>
    %175 = vector.extract_strided_slice %105 {offsets = [0, 0], sizes = [4, 17], strides = [1, 1]} : vector<4x512xf32> to vector<4x17xf32>
    %176 = tpu.concatenate %174, %175 in 1 : vector<4x495xf32>, vector<4x17xf32> -> vector<4x512xf32>
    %177 = vector.extract_strided_slice %0 {offsets = [8, 0], sizes = [1, 512], strides = [1, 1]} : vector<9x512xf32> to vector<1x512xf32>
    %178 = vector.broadcast %177 : vector<1x512xf32> to vector<4x512xf32>
    %179 = arith.mulf %176, %178 : vector<4x512xf32>
    %180 = vector.extract_strided_slice %106 {offsets = [0, 32], sizes = [4, 4], strides = [1, 1]} : vector<4x36xf32> to vector<4x4xf32>
    %cst_36 = arith.constant dense<0.000000e+00> : vector<4x512xf32>
    %181 = tpu.matmul %180, %179, %cst_36 {dimension_numbers = #tpu.dot_dimension_numbers<[1], [0], [0], [1], [0, 0, 1, 1], [], []>} : vector<4x4xf32>, vector<4x512xf32>, vector<4x512xf32> -> vector<4x512xf32>
    %182 = arith.addf %173, %181 : vector<4x512xf32>
    %c0_37 = arith.constant 0 : index
    %c0_38 = arith.constant 0 : index
    %183 = vector.load %arg7[%c0_37, %c0_38] : memref<4x1xf32, #tpu.memory_space<vmem>>, vector<4x1xf32>
    %c0_39 = arith.constant 0 : index
    %c0_40 = arith.constant 0 : index
    %184 = vector.load %arg8[%c0_39, %c0_40] : memref<4x1xf32, #tpu.memory_space<vmem>>, vector<4x1xf32>
    %cst_41 = arith.constant dense<0.000000e+00> : vector<4xf32>
    %185 = vector.multi_reduction <add>, %182, %cst_41 [1] : vector<4x512xf32> to vector<4xf32>
    %186 = vector.shape_cast %185 : vector<4xf32> to vector<4x1xf32>
    %187 = arith.mulf %182, %182 : vector<4x512xf32>
    %cst_42 = arith.constant dense<0.000000e+00> : vector<4xf32>
    %188 = vector.multi_reduction <add>, %187, %cst_42 [1] : vector<4x512xf32> to vector<4xf32>
    %189 = vector.shape_cast %188 : vector<4xf32> to vector<4x1xf32>
    %cst_43 = arith.constant 0.001953125 : f32
    %190 = vector.broadcast %cst_43 : f32 to vector<4x1xf32>
    %191 = arith.mulf %186, %190 : vector<4x1xf32>
    %cst_44 = arith.constant 0.001953125 : f32
    %192 = vector.broadcast %cst_44 : f32 to vector<4x1xf32>
    %193 = arith.mulf %189, %192 : vector<4x1xf32>
    %194 = arith.mulf %191, %191 : vector<4x1xf32>
    %195 = arith.subf %193, %194 : vector<4x1xf32>
    %cst_45 = arith.constant 0.000000e+00 : f32
    %196 = vector.broadcast %cst_45 : f32 to vector<4x1xf32>
    %197 = arith.maximumf %195, %196 : vector<4x1xf32>
    %cst_46 = arith.constant 9.99999974E-6 : f32
    %198 = vector.broadcast %cst_46 : f32 to vector<4x1xf32>
    %199 = arith.addf %197, %198 : vector<4x1xf32>
    %200 = math.rsqrt %199 : vector<4x1xf32>
    %201 = arith.mulf %183, %200 : vector<4x1xf32>
    %202 = arith.mulf %191, %201 : vector<4x1xf32>
    %203 = arith.subf %184, %202 : vector<4x1xf32>
    %204 = vector.broadcast %201 : vector<4x1xf32> to vector<4x512xf32>
    %205 = arith.mulf %182, %204 : vector<4x512xf32>
    %206 = vector.broadcast %203 : vector<4x1xf32> to vector<4x512xf32>
    %207 = arith.addf %205, %206 : vector<4x512xf32>
    %c0_47 = arith.constant 0 : index
    %c0_48 = arith.constant 0 : index
    %208 = vector.load %arg2[%c0_47, %c0_48] : memref<4x512xf32, #tpu.memory_space<vmem>>, vector<4x512xf32>
    %209 = arith.addf %207, %208 : vector<4x512xf32>
    %cst_49 = arith.constant 0.000000e+00 : f32
    %210 = vector.broadcast %cst_49 : f32 to vector<4x512xf32>
    %211 = arith.maximumf %209, %210 : vector<4x512xf32>
    %c0_50 = arith.constant 0 : index
    %c0_51 = arith.constant 0 : index
    %212 = vector.load %arg9[%c0_50, %c0_51] : memref<4x512xf32, #tpu.memory_space<vmem>>, vector<4x512xf32>
    tpu.vector_store %arg9[%c0_50, %c0_51], %211 {strides = array<i32>} : memref<4x512xf32, #tpu.memory_space<vmem>>, vector<4x512xf32>,
    return
  }
  func.func @transform_0(%arg0: i32) -> (i32, i32) {
    %c0_i32 = arith.constant 0 : i32
    %c0_i32_0 = arith.constant 0 : i32
    %c0_i32_1 = arith.constant 0 : i32
    return %c0_i32, %c0_i32_0 : i32, i32
  }
  func.func @transform_1(%arg0: i32) -> (i32, i32) {
    %c0_i32 = arith.constant 0 : i32
    %c0_i32_0 = arith.constant 0 : i32
    %c0_i32_1 = arith.constant 0 : i32
    return %c0_i32, %c0_i32_0 : i32, i32
  }
  func.func @transform_2(%arg0: i32) -> (i32, i32) {
    %c0_i32 = arith.constant 0 : i32
    %c0_i32_0 = arith.constant 0 : i32
    %c0_i32_1 = arith.constant 0 : i32
    return %c0_i32, %c0_i32_0 : i32, i32
  }
  func.func @transform_3(%arg0: i32) -> (i32, i32) {
    %c0_i32 = arith.constant 0 : i32
    %c0_i32_0 = arith.constant 0 : i32
    %c0_i32_1 = arith.constant 0 : i32
    return %c0_i32, %c0_i32_0 : i32, i32
  }
  func.func @transform_4(%arg0: i32) -> (i32, i32) {
    %c0_i32 = arith.constant 0 : i32
    %c0_i32_0 = arith.constant 0 : i32
    %c0_i32_1 = arith.constant 0 : i32
    return %c0_i32, %c0_i32_0 : i32, i32
  }
  func.func @transform_5(%arg0: i32) -> (i32, i32) {
    %c0_i32 = arith.constant 0 : i32
    %c0_i32_0 = arith.constant 0 : i32
    %c0_i32_1 = arith.constant 0 : i32
    return %c0_i32, %c0_i32_0 : i32, i32
  }
  func.func @transform_6(%arg0: i32) -> (i32, i32) {
    %c0_i32 = arith.constant 0 : i32
    %c0_i32_0 = arith.constant 0 : i32
    %c0_i32_1 = arith.constant 0 : i32
    return %c0_i32, %c0_i32_0 : i32, i32
  }
  func.func @transform_7(%arg0: i32) -> (i32, i32) {
    %c0_i32 = arith.constant 0 : i32
    %c0_i32_0 = arith.constant 0 : i32
    %c0_i32_1 = arith.constant 0 : i32
    return %c0_i32, %c0_i32_0 : i32, i32
  }
  func.func @transform_8(%arg0: i32) -> (i32, i32) {
    %c0_i32 = arith.constant 0 : i32
    %c0_i32_0 = arith.constant 0 : i32
    %c0_i32_1 = arith.constant 0 : i32
    return %c0_i32, %c0_i32_0 : i32, i32
  }
}

</mosaic_0001>

<bundles_post_ra>
// kernel: residual_block.1
= control target key start
LH: loop header
LB: loop body
LE: loop exit
PB: predicated region body
PF: predicated region fallthrough
CT: control target
= control target key end

     0   :  { %s2625_s9 = smov 124   ;;  %s2626_s12 = smov 17   ;;  %vm62_vm0 = vcmask 138240   ;;  %vm99_vm1 = vcmask 130048   ;;  %vm122_vm2 = vcmask 1043456   ;;  %vm119_vm3 = vcmask 31744   ;;  %s3423_s1 = inlined_call_operand.vmem [shape: f32[4,512], index: 1, kind: input, shape index: {}]   ;;  %s3424_s2 = inlined_call_operand.vmem [shape: f32[4,36], index: 2, kind: input, shape index: {}]   ;;  %s3425_s0 = inlined_call_operand.vmem [shape: f32[9,512], index: 0, kind: input, shape index: {}]   ;;  %s3426_s5 = inlined_call_operand.vmem [shape: f32[4,36], index: 5, kind: input, shape index: {}]   ;;  %s3427_s3 = inlined_call_operand.vmem [shape: f32[4,1], index: 3, kind: input, shape index: {}]   ;;  %s3428_s4 = inlined_call_operand.vmem [shape: f32[4,1], index: 4, kind: input, shape index: {}]   ;;  %s3429_s6 = inlined_call_operand.vmem [shape: f32[4,1], index: 6, kind: input, shape index: {}]   ;;  %s3430_s7 = inlined_call_operand.vmem [shape: f32[4,1], index: 7, kind: input, shape index: {}]   ;;  %s3431_s8 = inlined_call_operand.vmem [shape: f32[4,512], index: 8, kind: output, shape index: {}]  }
   0x1   :  { %v2689_v0 = vld [vmem:[%s3423_s1 + $0x8] sm:$0xff]  ;;  %v2694_v1 = vld [vmem:[%s3424_s2] sm:$0xf]  ;;  %s2627_s2 = smov 16   ;;  %s2629_s13 = smov 112   ;;  %v2794_v48 = vld [vmem:[%s3425_s0 + $0x18] sm:$0xff] }
   0x2   :  { %49 = vst [vmem:[#allocation1 + $0x10] ss:$2 sm:$0xff] %v2689_v0  ;;  %117 = vrot.lane.b32.xlu2 %v2694_v1, %s2625_s9  ;;  %v2703_v2 = vld [vmem:[%s3423_s1] sm:$0xff]  ;;  %s2628_s1 = smov 15   ;;  %s2630_s14 = smov 120   ;;  %v74_v49 = vperm.slane %v2794_v48, 0 }
   0x3   :  { %41 = vst [vmem:[#allocation1] ss:$2 sm:$0xff] %v2689_v0  ;;  %s2631_s15 = smov 1   ;;  %s2632_s16 = smov 116   ;;  %v111_v50 = vperm.slane %v2794_v48, 1  ;;  %vm329_vm4 = vcmask 121856  }
   0x4   :  { %s2633_s17 = smov 108   ;;  %s2634_s18 = smov 127   ;;  %vm466_vm5 = vcmask 7168   ;;  %vm701_vm6 = vcmask 1039360   ;;  %vm838_vm7 = vcmask 924672   ;;  %vm975_vm8 = vcmask 916480  }
   0x5   :  { %s2635_s19 = smov 113   ;;  %s2636_s20 = smov 104   ;;  %vm1112_vm9 = vcmask 908288  }
   0x6   :  { %s2637_s21 = smov 100   ;;  %s2638_s22 = smov 111  }
   0x7   :  { %s2639_s27 = smov 96  }
   0x9   :  { %v52_v3 = vld.sshfl [vmem:[#allocation1 + $0x10] sm:$0xff pattern:$0x75316420]  ;;  %v53_v4 = vld.sshfl [vmem:[#allocation1 + $0x18] sm:$0xff pattern:$0x75316420] }
   0xa   :  { %58 = vrot.lane.b32.xlu1 %v52_v3, %s2626_s12  ;;  %86 = vst [vmem:[#allocation1 + $0x10] ss:$2 sm:$0xff] %v2689_v0  ;;  %60 = vrot.lane.b32.xlu2 %v53_v4, %s2626_s12  ;;  %v42_v5 = vld.sshfl [vmem:[#allocation1 + $0x8] sm:$0xff pattern:$0x75316420] }
   0xb   :  { %47 = vst [vmem:[#allocation1] ss:$2 sm:$0xff] %v2703_v2 }
  0x11   :  { %v90_v6 = vld.sshfl [vmem:[#allocation1 + $0x18] sm:$0xff pattern:$0x75316420]  ;;  %v89_v7 = vld.sshfl [vmem:[#allocation1 + $0x10] sm:$0xff pattern:$0x75316420] }
  0x12   :  { %97 = vrot.lane.b32.xlu1 %v90_v6, %s2627_s2  ;;  %95 = vrot.lane.b32.xlu0 %v89_v7, %s2627_s2  ;;  %316 = vst [vmem:[#allocation1 + $0x10] ss:$2 sm:$0xff] %v2689_v0  ;;  %v51_v8 = vld.sshfl [vmem:[#allocation1 + $0x8] sm:$0xff pattern:$0x75316420] }
  0x13   :  { %v50_v9 = vld.sshfl [vmem:[#allocation1] sm:$0xff pattern:$0x75316420] }
  0x14   :  { %79 = vst [vmem:[#allocation1] ss:$2 sm:$0xff] %v2689_v0 }
  0x19   :  { %v319_v10 = vld.sshfl [vmem:[#allocation1 + $0x10] sm:$0xff pattern:$0x75316420]  ;;  %v320_v11 = vld.sshfl [vmem:[#allocation1 + $0x18] sm:$0xff pattern:$0x75316420] }
  0x1a   :  { %56 = vrot.lane.b32.xlu0 %v51_v8, %s2626_s12  ;;  %54 = vrot.lane.b32.xlu1 %v50_v9, %s2626_s12  ;;  %453 = vst [vmem:[#allocation1 + $0x10] ss:$2 sm:$0xff] %v2689_v0 }
  0x1b   :  { %v80_v12 = vld.sshfl [vmem:[#allocation1 + $0x8] sm:$0xff pattern:$0x75316420] }
  0x1c   :  { %84 = vst [vmem:[#allocation1] ss:$2 sm:$0xff] %v2703_v2 }
  0x21   :  { %v457_v13 = vld.sshfl [vmem:[#allocation1 + $0x18] sm:$0xff pattern:$0x75316420]  ;;  %v456_v14 = vld.sshfl [vmem:[#allocation1 + $0x10] sm:$0xff pattern:$0x75316420] }
  0x22   :  { %43 = vrot.lane.b32.xlu0 %v42_v5, %s2626_s12  ;;  %81 = vrot.lane.b32.xlu1 %v80_v12, %s2627_s2  ;;  %587 = vst [vmem:[#allocation1 + $0x10] ss:$2 sm:$0xff] %v2689_v0 }
  0x23   :  { %v87_v15 = vld.sshfl [vmem:[#allocation1] sm:$0xff pattern:$0x75316420]  ;;  %v88_v16 = vld.sshfl [vmem:[#allocation1 + $0x8] sm:$0xff pattern:$0x75316420] }
  0x24   :  { %91 = vrot.lane.b32.xlu2 %v87_v15, %s2627_s2  ;;  %309 = vst [vmem:[#allocation1] ss:$2 sm:$0xff] %v2689_v0 }
  0x29   :  { %v2722_v17 = vld.sshfl [vmem:[#allocation1 + $0x10] sm:$0xff pattern:$0x75316420]  ;;  %v2724_v18 = vld.sshfl [vmem:[#allocation1 + $0x18] sm:$0xff pattern:$0x75316420] }
  0x2a   :  { %325 = vrot.lane.b32.xlu0 %v319_v10, %s2628_s1  ;;  %327 = vrot.lane.b32.xlu1 %v320_v11, %s2628_s1  ;;  %688 = vst [vmem:[#allocation1 + $0x10] ss:$2 sm:$0xff] %v2689_v0  ;;  %v3451_v11 = vperm.slane %v2794_v48, 2 }
  0x2b   :  { %v310_v19 = vld.sshfl [vmem:[#allocation1 + $0x8] sm:$0xff pattern:$0x75316420] }
  0x2c   :  { %583 = vrot.lane.b32.xlu2 %v2694_v1, %s2629_s13  ;;  %314 = vst [vmem:[#allocation1] ss:$2 sm:$0xff] %v2703_v2 }
  0x31   :  { %v692_v20 = vld.sshfl [vmem:[#allocation1 + $0x18] sm:$0xff pattern:$0x75316420]  ;;  %v691_v21 = vld.sshfl [vmem:[#allocation1 + $0x10] sm:$0xff pattern:$0x75316420] }
  0x32   :  { %346 = vrot.lane.b32.xlu1 %v2694_v1, %s2630_s14  ;;  %93 = vrot.lane.b32.xlu0 %v88_v16, %s2627_s2  ;;  %825 = vst [vmem:[#allocation1 + $0x10] ss:$2 sm:$0xff] %v2689_v0 }
  0x33   :  { %v318_v22 = vld.sshfl [vmem:[#allocation1 + $0x8] sm:$0xff pattern:$0x75316420]  ;;  %v317_v23 = vld.sshfl [vmem:[#allocation1] sm:$0xff pattern:$0x75316420] }
  0x34   :  { %311 = vrot.lane.b32.xlu2 %v310_v19, %s2628_s1  ;;  %446 = vst [vmem:[#allocation1] ss:$2 sm:$0xff] %v2689_v0  ;;  %v2851_v19 = vld [vmem:[%s3425_s0 + $0x10] sm:$0xff] }
  0x39   :  { %v828_v25 = vld.sshfl [vmem:[#allocation1 + $0x10] sm:$0xff pattern:$0x75316420]  ;;  %v829_v26 = vld.sshfl [vmem:[#allocation1 + $0x18] sm:$0xff pattern:$0x75316420] }
  0x3a   :  { %464 = vrot.lane.b32.xlu1 %v457_v13, %s2631_s15  ;;  %462 = vrot.lane.b32.xlu0 %v456_v14, %s2631_s15  ;;  %962 = vst [vmem:[#allocation1 + $0x10] ss:$2 sm:$0xff] %v2689_v0 }
  0x3b   :  { %v447_v24 = vld.sshfl [vmem:[#allocation1 + $0x8] sm:$0xff pattern:$0x75316420] }
  0x3c   :  { %323 = vrot.lane.b32.xlu2 %v318_v22, %s2628_s1  ;;  %451 = vst [vmem:[#allocation1] ss:$2 sm:$0xff] %v2703_v2  ;;  %v110_v22 = vperm.slane %v2851_v19, 1 }
  0x41   :  { %v966_v29 = vld.sshfl [vmem:[#allocation1 + $0x18] sm:$0xff pattern:$0x75316420]  ;;  %v965_v30 = vld.sshfl [vmem:[#allocation1 + $0x10] sm:$0xff pattern:$0x75316420] }
  0x42   :  { %483 = vrot.lane.b32.xlu1 %v2694_v1, %s2632_s16  ;;  %321 = vrot.lane.b32.xlu0 %v317_v23, %s2628_s1  ;;  %1099 = vst [vmem:[#allocation1 + $0x10] ss:$2 sm:$0xff] %v2689_v0  ;;  %v73_v23 = vperm.slane %v2851_v19, 0 }
  0x43   :  { %v455_v27 = vld.sshfl [vmem:[#allocation1 + $0x8] sm:$0xff pattern:$0x75316420]  ;;  %v454_v28 = vld.sshfl [vmem:[#allocation1] sm:$0xff pattern:$0x75316420] }
  0x44   :  { %723 = vrot.lane.b32.xlu2 %v2694_v1, %s2633_s17  ;;  %585 = vst [vmem:[#allocation1] ss:$2 sm:$0xff] %v2703_v2 }
  0x49   :  { %v1103_v33 = vld.sshfl [vmem:[#allocation1 + $0x18] sm:$0xff pattern:$0x75316420]  ;;  %v1102_v36 = vld.sshfl [vmem:[#allocation1 + $0x10] sm:$0xff pattern:$0x75316420] }
  0x4a   :  { %699 = vrot.lane.b32.xlu1 %v692_v20, %s2634_s18  ;;  %697 = vrot.lane.b32.xlu0 %v691_v21, %s2634_s18  ;;  %2422 = vst [vmem:[#allocation1 + $0x10] ss:$2 sm:$0xff] %v2689_v0  ;;  %v2822_v0 = vld [vmem:[%s3425_s0] sm:$0xff]  ;;  %v2856_v20 = vld [vmem:[%s3425_s0 + $0x8] sm:$0xff] }
  0x4b   :  { %v2752_v31 = vld.sshfl [vmem:[#allocation1] sm:$0xff pattern:$0x75316420]  ;;  %v2754_v32 = vld.sshfl [vmem:[#allocation1 + $0x8] sm:$0xff pattern:$0x75316420] }
  0x4c   :  { %448 = vrot.lane.b32.xlu2 %v447_v24, %s2631_s15  ;;  %686 = vst [vmem:[#allocation1] ss:$2 sm:$0xff] %v2703_v2  ;;  %v71_v3 = vperm.slane %v2822_v0, 0  ;;  %v108_v4 = vperm.slane %v2822_v0, 1  ;;  %v109_v21 = vperm.slane %v2856_v20, 1  ;;  %v72_v24 = vperm.slane %v2856_v20, 0 }
  0x52   :  { %836 = vrot.lane.b32.xlu1 %v829_v26, %s2635_s19  ;;  %458 = vrot.lane.b32.xlu0 %v454_v28, %s2631_s15 }
  0x53   :  { %v690_v34 = vld.sshfl [vmem:[#allocation1 + $0x8] sm:$0xff pattern:$0x75316420]  ;;  %v689_v35 = vld.sshfl [vmem:[#allocation1] sm:$0xff pattern:$0x75316420] }
  0x54   :  { %460 = vrot.lane.b32.xlu2 %v455_v27, %s2631_s15  ;;  %709 = vst [vmem:[#allocation1] ss:$2 sm:$0xff] %v2703_v2 }
  0x5a   :  { %834 = vrot.lane.b32.xlu0 %v828_v25, %s2635_s19  ;;  %695 = vrot.lane.b32.xlu1 %v690_v34, %s2634_s18  ;;  %v3450_v25 = vperm.slane %v2851_v19, 2 }
  0x5b   :  { %v710_v37 = vld.sshfl [vmem:[#allocation1] sm:$0xff pattern:$0x75316420] }
  0x5c   :  { %860 = vrot.lane.b32.xlu2 %v2694_v1, %s2636_s20  ;;  %823 = vst [vmem:[#allocation1] ss:$2 sm:$0xff] %v2703_v2  ;;  %v2775_v40 = vpop.permute.xlu2 %117 }
  0x62   :  { %973 = vrot.lane.b32.xlu1 %v966_v29, %s2629_s13  ;;  %693 = vrot.lane.b32.xlu0 %v689_v35, %s2634_s18 }
  0x63   :  { %v827_v38 = vld.sshfl [vmem:[#allocation1 + $0x8] sm:$0xff pattern:$0x75316420]  ;;  %v826_v39 = vld.sshfl [vmem:[#allocation1] sm:$0xff pattern:$0x75316420] }
  0x64   :  { %997 = vrot.lane.b32.xlu2 %v2694_v1, %s2637_s21  ;;  %846 = vst [vmem:[#allocation1] ss:$2 sm:$0xff] %v2703_v2  ;;  %v61_v44 = vpop.permute.xlu2 %60 }
  0x6a   :  { %971 = vrot.lane.b32.xlu0 %v965_v30, %s2629_s13  ;;  %832 = vrot.lane.b32.xlu1 %v827_v38, %s2635_s19 }
  0x6b   :  { %v847_v41 = vld.sshfl [vmem:[#allocation1] sm:$0xff pattern:$0x75316420] }
  0x6c   :  { %711 = vrot.lane.b32.xlu2 %v710_v37, %s2634_s18  ;;  %960 = vst [vmem:[#allocation1] ss:$2 sm:$0xff] %v2703_v2 }
  0x72   :  { %1110 = vrot.lane.b32.xlu1 %v1103_v33, %s2638_s22  ;;  %830 = vrot.lane.b32.xlu0 %v826_v39, %s2635_s19 }
  0x73   :  { %v964_v42 = vld.sshfl [vmem:[#allocation1 + $0x8] sm:$0xff pattern:$0x75316420]  ;;  %v963_v43 = vld.sshfl [vmem:[#allocation1] sm:$0xff pattern:$0x75316420] }
  0x74   :  { %848 = vrot.lane.b32.xlu2 %v847_v41, %s2635_s19  ;;  %983 = vst [vmem:[#allocation1] ss:$2 sm:$0xff] %v2703_v2 }
  0x7a   :  { %1108 = vrot.lane.b32.xlu0 %v1102_v36, %s2638_s22  ;;  %969 = vrot.lane.b32.xlu1 %v964_v42, %s2629_s13  ;;  %v3444_v42 = vperm.slane %v2794_v48, 3 }
  0x7b   :  { %v984_v45 = vld.sshfl [vmem:[#allocation1] sm:$0xff pattern:$0x75316420] }
  0x7c   :  { %985 = vrot.lane.b32.xlu2 %v984_v45, %s2629_s13  ;;  %1097 = vst [vmem:[#allocation1] ss:$2 sm:$0xff] %v2703_v2  ;;  %v2787_v46 = vpop.permute.xlu1 %58  ;;  %v3445_v45 = vperm.slane %v2851_v19, 3 }
  0x7d   :  { %v65_v51 = vsel %vm62_vm0, %v2787_v46, %v61_v44 }
  0x7e   :  { %v2789_v47 = vpop.permute.xlu2 %91  ;;  %v78_v57 = vmul.f32 %v74_v49, %v65_v51 }
  0x82   :  { %967 = vrot.lane.b32.xlu0 %v963_v43, %s2629_s13 }
  0x83   :  { %v1101_v52 = vld.sshfl [vmem:[#allocation1 + $0x8] sm:$0xff pattern:$0x75316420]  ;;  %v1100_v53 = vld.sshfl [vmem:[#allocation1] sm:$0xff pattern:$0x75316420] }
  0x84   :  { %1106 = vrot.lane.b32.xlu1 %v1101_v52, %s2638_s22  ;;  %v98_v54 = vpop.permute.xlu1 %97  ;;  %v96_v55 = vpop.permute.xlu0 %95  ;;  %1120 = vst [vmem:[#allocation1] ss:$2 sm:$0xff] %v2703_v2 }
  0x85   :  { %v102_v56 = vsel %vm99_vm1, %v96_v55, %v98_v54  ;;  %v3448_v54 = vperm.slane %v2856_v20, 2 }
  0x86   :  { %v2806_v58 = vpop.permute.xlu2 %583  ;;  %v115_v59 = vmul.f32 %v111_v50, %v102_v56 }
  0x88   :  { %2461 = vmatpush.msk.msra.mxu3 %vm122_vm2, %v115_v59 }
  0x89   :  { %2462 = vmatmul.msk.f32.vlgmr.msra.gmra.mxu3 %vm119_vm3, %v2775_v40 }
  0x8a   :  { %2469 = vmatpush.msk.msrb.mxu3 %vm122_vm2, %v78_v57  ;;  %1104 = vrot.lane.b32.xlu0 %v1100_v53, %s2638_s22  ;;  %v3449_v53 = vperm.slane %v2822_v0, 2 }
  0x8b   :  { %v1121_v60 = vld.sshfl [vmem:[#allocation1] sm:$0xff pattern:$0x75316420] }
  0x8c   :  { %1122 = vrot.lane.b32.xlu2 %v1121_v60, %s2638_s22  ;;  %2420 = vst [vmem:[#allocation1] ss:$2 sm:$0xff] %v2703_v2  ;;  %v57_v61 = vpop.permute.xlu0 %56  ;;  %v55_v62 = vpop.permute.xlu1 %54 }
  0x8d   :  { %v64_v28 = vsel %vm62_vm0, %v57_v61, %v2787_v46  ;;  %v63_v29 = vsel %vm62_vm0, %v55_v62, %v57_v61 }
  0x8e   :  { %v2817_v63 = vpop.permute.xlu2 %311  ;;  %v77_v38 = vmul.f32 %v73_v23, %v64_v28  ;;  %v76_v39 = vmul.f32 %v72_v24, %v63_v29  ;;  %v3439_v29 = vperm.slane %v2851_v19, 6 }
  0x91   :  { %2470 = vmatmul.msk.f32.vlgmr.msrb.gmra.mxu3 %vm119_vm3, %v2694_v1 }
  0x94   :  { %1134 = vrot.lane.b32.xlu2 %v2694_v1, %s2639_s27  ;;  %v44_v2 = vpop.permute.xlu0 %43  ;;  %v82_v5 = vpop.permute.xlu1 %81 }
  0x95   :  { %v70_v6 = vsel %vm62_vm0, %v44_v2, %v55_v62  ;;  %v107_v7 = vsel %vm99_vm1, %v82_v5, %v2789_v47 }
  0x96   :  { %v75_v8 = vmul.f32 %v71_v3, %v70_v6  ;;  %v324_v9 = vpop.permute.xlu2 %323  ;;  %v112_v10 = vmul.f32 %v108_v4, %v107_v7  ;;  %v3447_v7 = vperm.slane %v2822_v0, 3 }
  0x98   :  { %2455 = vmatpush.msk.msra.mxu0 %vm122_vm2, %v112_v10  ;;  %v3440_v10 = vperm.slane %v2794_v48, 5 }
  0x99   :  { %2456 = vmatmul.msk.f32.vlgmr.msra.gmra.mxu0 %vm119_vm3, %v2775_v40 }
  0x9a   :  { %2463 = vmatpush.msk.msrb.mxu0 %vm122_vm2, %v75_v8  ;;  %v3446_v8 = vperm.slane %v2856_v20, 3 }
  0x9c   :  { %v326_v12 = vpop.permute.xlu0 %325  ;;  %v328_v13 = vpop.permute.xlu1 %327 }
  0x9d   :  { %v332_v14 = vsel %vm329_vm4, %v326_v12, %v328_v13  ;;  %v331_v34 = vsel %vm329_vm4, %v324_v9, %v326_v12 }
  0x9e   :  { %v345_v15 = vmul.f32 %v3451_v11, %v332_v14  ;;  %v2845_v16 = vpop.permute.xlu2 %723  ;;  %v344_v41 = vmul.f32 %v3450_v25, %v331_v34 }
  0xa0   :  { %2477 = vmatpush.msk.msra.mxu3 %vm122_vm2, %v345_v15 }
  0xa1   :  { %2464 = vmatmul.msk.f32.vlgmr.msrb.gmra.mxu0 %vm119_vm3, %v2694_v1 }
  0xa4   :  { %v347_v26 = vpop.permute.xlu1 %346  ;;  %v94_v27 = vpop.permute.xlu0 %93 }
  0xa5   :  { %v100_v30 = vsel %vm99_vm1, %v2789_v47, %v94_v27  ;;  %v101_v33 = vsel %vm99_vm1, %v94_v27, %v96_v55  ;;  %2478 = vmatmul.msk.f32.vlgmr.msra.gmra.mxu3 %vm119_vm3, %v347_v26 }
  0xa6   :  { %v449_v35 = vpop.permute.xlu2 %448  ;;  %v113_v36 = vmul.f32 %v109_v21, %v100_v30  ;;  %v114_v37 = vmul.f32 %v110_v22, %v101_v33  ;;  %v3442_v30 = vperm.slane %v2856_v20, 5 }
  0xa8   :  { %2457 = vmatpush.msk.msra.mxu1 %vm122_vm2, %v113_v36  ;;  %2459 = vmatpush.msk.msra.mxu2 %vm122_vm2, %v114_v37 }
  0xa9   :  { %2458 = vmatmul.msk.f32.vlgmr.msra.gmra.mxu1 %vm119_vm3, %v2775_v40  ;;  %2460 = vmatmul.msk.f32.vlgmr.msra.gmra.mxu2 %vm119_vm3, %v2775_v40 }
  0xaa   :  { %2465 = vmatpush.msk.msrb.mxu1 %vm122_vm2, %v76_v39  ;;  %2467 = vmatpush.msk.msrb.mxu2 %vm122_vm2, %v77_v38 }
  0xac   :  { %2475 = vmatpush.msk.msra.mxu2 %vm122_vm2, %v344_v41  ;;  %v465_v43 = vpop.permute.xlu1 %464  ;;  %v463_v44 = vpop.permute.xlu0 %462 }
  0xad   :  { %v469_v46 = vsel %vm466_vm5, %v463_v44, %v465_v43 }
  0xae   :  { %v482_v47 = vmul.f32 %v3444_v42, %v469_v46  ;;  %v461_v51 = vpop.permute.xlu2 %460 }
  0xaf   :  { %v468_v40 = vsel %vm466_vm5, %v461_v51, %v463_v44 }
  0xb0   :  { %v481_v52 = vmul.f32 %v3445_v45, %v468_v40  ;;  %2485 = vmatpush.msk.msrb.mxu3 %vm122_vm2, %v482_v47  ;;  %v3435_v47 = vperm.slane %v2794_v48, 7 }
  0xb1   :  { %2466 = vmatmul.msk.f32.vlgmr.msrb.gmra.mxu1 %vm119_vm3, %v2694_v1  ;;  %2468 = vmatmul.msk.f32.vlgmr.msrb.gmra.mxu2 %vm119_vm3, %v2694_v1 }
  0xb2   :  { %2483 = vmatpush.msk.msrb.mxu2 %vm122_vm2, %v481_v52  ;;  %2493 = vmatpush.msk.msra.mxu3 %vm122_vm2, %v2724_v18  ;;  %v3441_v18 = vperm.slane %v2851_v19, 5 }
  0xb4   :  { %v484_v55 = vpop.permute.xlu1 %483  ;;  %v322_v56 = vpop.permute.xlu0 %321 }
  0xb5   :  { %v330_v57 = vsel %vm329_vm4, %v322_v56, %v324_v9  ;;  %v337_v59 = vsel %vm329_vm4, %v2817_v63, %v322_v56  ;;  %2486 = vmatmul.msk.f32.vlgmr.msrb.gmra.mxu3 %vm119_vm3, %v484_v55  ;;  %v3434_v56 = vperm.slane %v2851_v19, 7 }
  0xb6   :  { %v342_v1 = vmul.f32 %v3449_v53, %v337_v59  ;;  %v343_v60 = vmul.f32 %v3448_v54, %v330_v57  ;;  %v2918_v61 = vpop.permute.xlu2 %860  ;;  %v3438_v57 = vperm.slane %v2856_v20, 6 }
  0xb8   :  { %2471 = vmatpush.msk.msra.mxu0 %vm122_vm2, %v342_v1  ;;  %2473 = vmatpush.msk.msra.mxu1 %vm122_vm2, %v343_v60 }
  0xb9   :  { %2472 = vmatmul.msk.f32.vlgmr.msra.gmra.mxu0 %vm119_vm3, %v347_v26  ;;  %2474 = vmatmul.msk.f32.vlgmr.msra.gmra.mxu1 %vm119_vm3, %v347_v26 }
  0xba   :  { %2476 = vmatmul.msk.f32.vlgmr.msra.gmra.mxu2 %vm119_vm3, %v347_v26 }
  0xbb   :  { %2491 = vmatpush.msk.msra.mxu2 %vm122_vm2, %v2722_v17 }
  0xbc   :  { %v700_v62 = vpop.permute.xlu1 %699  ;;  %v698_v63 = vpop.permute.xlu0 %697 }
  0xbd   :  { %v704_v2 = vsel %vm701_vm6, %v698_v63, %v700_v62  ;;  %2494 = vmatmul.msk.f32.vlgmr.msra.gmra.mxu3 %vm119_vm3, %v2806_v58 }
  0xbe   :  { %v2931_v5 = vpop.permute.xlu2 %997  ;;  %v721_v6 = vmul.f32 %v3441_v18, %v704_v2  ;;  %v3437_v2 = vperm.slane %v2822_v0, 6 }
  0xc2   :  { %2484 = vmatmul.msk.f32.vlgmr.msrb.gmra.mxu2 %vm119_vm3, %v484_v55 }
  0xc3   :  { %2499 = vmatpush.msk.msrb.mxu2 %vm122_vm2, %v721_v6 }
  0xc4   :  { %v837_v17 = vpop.permute.xlu1 %836  ;;  %v459_v9 = vpop.permute.xlu0 %458 }
  0xc5   :  { %v467_v12 = vsel %vm466_vm5, %v459_v9, %v461_v51  ;;  %v474_v13 = vsel %vm466_vm5, %v449_v35, %v459_v9  ;;  %v3436_v35 = vperm.slane %v2794_v48, 6  ;;  %v3021_v9 = vld [vmem:[%s3425_s0 + $0x38] ss:$0 sm:$0xff] }
  0xc6   :  { %v479_v14 = vmul.f32 %v3447_v7, %v474_v13  ;;  %v480_v15 = vmul.f32 %v3446_v8, %v467_v12  ;;  %v712_v26 = vpop.permute.xlu2 %711 }
  0xc7   :  { %v714_v27 = vsel %vm701_vm6, %v700_v62, %v712_v26 }
  0xc8   :  { %v722_v28 = vmul.f32 %v3440_v10, %v714_v27  ;;  %2479 = vmatpush.msk.msrb.mxu0 %vm122_vm2, %v479_v14  ;;  %2481 = vmatpush.msk.msrb.mxu1 %vm122_vm2, %v480_v15  ;;  %v3034_v27 = vld [vmem:[%s3425_s0 + $0x30] ss:$0 sm:$0xff] }
  0xc9   :  { %2480 = vmatmul.msk.f32.vlgmr.msrb.gmra.mxu0 %vm119_vm3, %v484_v55  ;;  %2482 = vmatmul.msk.f32.vlgmr.msrb.gmra.mxu1 %vm119_vm3, %v484_v55 }
  0xca   :  { %2501 = vmatpush.msk.msrb.mxu3 %vm122_vm2, %v722_v28  ;;  %2492 = vmatmul.msk.f32.vlgmr.msra.gmra.mxu2 %vm119_vm3, %v2806_v58  ;;  %v3432_v28 = vperm.slane %v2856_v20, 7 }
  0xcb   :  { %2502 = vmatmul.msk.f32.vlgmr.msrb.gmra.mxu3 %vm119_vm3, %v2845_v16  ;;  %2489 = vmatpush.msk.msra.mxu1 %vm122_vm2, %v2754_v32 }
  0xcc   :  { %v835_v33 = vpop.permute.xlu0 %834  ;;  %v696_v34 = vpop.permute.xlu1 %695  ;;  %2487 = vmatpush.msk.msra.mxu0 %vm122_vm2, %v2752_v31  ;;  %v3443_v31 = vperm.slane %v2822_v0, 5 }
  0xcd   :  { %v841_v36 = vsel %vm838_vm7, %v835_v33, %v837_v17  ;;  %v703_v37 = vsel %vm701_vm6, %v696_v34, %v698_v63 }
  0xce   :  { %v858_v38 = vmul.f32 %v3439_v29, %v841_v36  ;;  %v720_v39 = vmul.f32 %v3442_v30, %v703_v37  ;;  %v849_v41 = vpop.permute.xlu2 %848 }
  0xcf   :  { %v851_v32 = vsel %vm838_vm7, %v837_v17, %v849_v41  ;;  %v3433_v41 = vperm.slane %v2822_v0, 7 }
  0xd0   :  { %v859_v43 = vmul.f32 %v3436_v35, %v851_v32  ;;  %2497 = vmatpush.msk.msrb.mxu1 %vm122_vm2, %v720_v39  ;;  %2507 = vmatpush.msk.msra.mxu2 %vm122_vm2, %v858_v38 }
  0xd1   :  { %2488 = vmatmul.msk.f32.vlgmr.msra.gmra.mxu0 %vm119_vm3, %v2806_v58  ;;  %2490 = vmatmul.msk.f32.vlgmr.msra.gmra.mxu1 %vm119_vm3, %v2806_v58 }
  0xd2   :  { %2509 = vmatpush.msk.msra.mxu3 %vm122_vm2, %v859_v43  ;;  %2500 = vmatmul.msk.f32.vlgmr.msrb.gmra.mxu2 %vm119_vm3, %v2845_v16  ;;  %v3053_v43 = vld [vmem:[%s3425_s0 + $0x28] ss:$0 sm:$0xff] }
  0xd3   :  { %2510 = vmatmul.msk.f32.vlgmr.msra.gmra.mxu3 %vm119_vm3, %v2918_v61 }
  0xd4   :  { %v974_v44 = vpop.permute.xlu1 %973  ;;  %v694_v46 = vpop.permute.xlu0 %693 }
  0xd5   :  { %v702_v51 = vsel %vm701_vm6, %v694_v46, %v696_v34 }
  0xd6   :  { %v719_v58 = vmul.f32 %v3443_v31, %v702_v51  ;;  %v986_v40 = vpop.permute.xlu2 %985 }
  0xd7   :  { %v988_v52 = vsel %vm975_vm8, %v974_v44, %v986_v40 }
  0xd8   :  { %v996_v55 = vmul.f32 %v3435_v47, %v988_v52  ;;  %2495 = vmatpush.msk.msrb.mxu0 %vm122_vm2, %v719_v58  ;;  %v3067_v52 = vld [vmem:[%s3425_s0 + $0x20] ss:$0 sm:$0xff] }
  0xd9   :  { %2496 = vmatmul.msk.f32.vlgmr.msrb.gmra.mxu0 %vm119_vm3, %v2845_v16  ;;  %2498 = vmatmul.msk.f32.vlgmr.msrb.gmra.mxu1 %vm119_vm3, %v2845_v16 }
  0xda   :  { %2517 = vmatpush.msk.msrb.mxu3 %vm122_vm2, %v996_v55  ;;  %2508 = vmatmul.msk.f32.vlgmr.msra.gmra.mxu2 %vm119_vm3, %v2918_v61 }
  0xdb   :  { %2518 = vmatmul.msk.f32.vlgmr.msrb.gmra.mxu3 %vm119_vm3, %v2931_v5 }
  0xdc   :  { %v972_v59 = vpop.permute.xlu0 %971  ;;  %v833_v1 = vpop.permute.xlu1 %832 }
  0xdd   :  { %v978_v60 = vsel %vm975_vm8, %v972_v59, %v974_v44  ;;  %v840_v62 = vsel %vm838_vm7, %v833_v1, %v835_v33 }
  0xde   :  { %v995_v16 = vmul.f32 %v3434_v56, %v978_v60  ;;  %v857_v63 = vmul.f32 %v3438_v57, %v840_v62 }
  0xe0   :  { %2505 = vmatpush.msk.msra.mxu1 %vm122_vm2, %v857_v63  ;;  %2515 = vmatpush.msk.msrb.mxu2 %vm122_vm2, %v995_v16 }
  0xe1   :  { %2506 = vmatmul.msk.f32.vlgmr.msra.gmra.mxu1 %vm119_vm3, %v2918_v61 }
  0xe2   :  { %2516 = vmatmul.msk.f32.vlgmr.msrb.gmra.mxu2 %vm119_vm3, %v2931_v5 }
  0xe4   :  { %v1111_v6 = vpop.permute.xlu1 %1110  ;;  %v831_v17 = vpop.permute.xlu0 %830 }
  0xe5   :  { %v839_v12 = vsel %vm838_vm7, %v831_v17, %v833_v1 }
  0xe6   :  { %v856_v13 = vmul.f32 %v3437_v2, %v839_v12  ;;  %v1123_v14 = vpop.permute.xlu2 %1122 }
  0xe7   :  { %v1125_v15 = vsel %vm1112_vm9, %v1111_v6, %v1123_v14 }
  0xe8   :  { %v1133_v26 = vmul.f32 %v3021_v9, %v1125_v15  ;;  %2503 = vmatpush.msk.msra.mxu0 %vm122_vm2, %v856_v13 }
  0xe9   :  { %2504 = vmatmul.msk.f32.vlgmr.msra.gmra.mxu0 %vm119_vm3, %v2918_v61 }
  0xea   :  { %2525 = vmatpush.msk.msra.mxu3 %vm122_vm2, %v1133_v26 }
  0xec   :  { %v1109_v33 = vpop.permute.xlu0 %1108  ;;  %v970_v34 = vpop.permute.xlu1 %969 }
  0xed   :  { %v1115_v36 = vsel %vm1112_vm9, %v1109_v33, %v1111_v6  ;;  %v977_v37 = vsel %vm975_vm8, %v970_v34, %v972_v59 }
  0xee   :  { %v1132_v38 = vmul.f32 %v3034_v27, %v1115_v36  ;;  %v994_v61 = vmul.f32 %v3432_v28, %v977_v37  ;;  %v1135_v39 = vpop.permute.xlu2 %1134 }
  0xef   :  { %2526 = vmatmul.msk.f32.vlgmr.msra.gmra.mxu3 %vm119_vm3, %v1135_v39 }
  0xf0   :  { %2513 = vmatpush.msk.msrb.mxu1 %vm122_vm2, %v994_v61  ;;  %2523 = vmatpush.msk.msra.mxu2 %vm122_vm2, %v1132_v38 }
  0xf1   :  { %2514 = vmatmul.msk.f32.vlgmr.msrb.gmra.mxu1 %vm119_vm3, %v2931_v5  ;;  %2524 = vmatmul.msk.f32.vlgmr.msra.gmra.mxu2 %vm119_vm3, %v1135_v39 }
  0xf4   :  { %v968_v32 = vpop.permute.xlu0 %967 }
  0xf5   :  { %v976_v44 = vsel %vm975_vm8, %v968_v32, %v970_v34 }
  0xf6   :  { %v993_v46 = vmul.f32 %v3433_v41, %v976_v44  ;;  %v1107_v51 = vpop.permute.xlu1 %1106 }
  0xf7   :  { %v1114_v58 = vsel %vm1112_vm9, %v1107_v51, %v1109_v33 }
  0xf8   :  { %v1131_v40 = vmul.f32 %v3053_v43, %v1114_v58  ;;  %2511 = vmatpush.msk.msrb.mxu0 %vm122_vm2, %v993_v46 }
  0xf9   :  { %2512 = vmatmul.msk.f32.vlgmr.msrb.gmra.mxu0 %vm119_vm3, %v2931_v5 }
  0xfa   :  { %2521 = vmatpush.msk.msra.mxu1 %vm122_vm2, %v1131_v40 }
  0xfb   :  { %2522 = vmatmul.msk.f32.vlgmr.msra.gmra.mxu1 %vm119_vm3, %v1135_v39 }
  0xfc   :  { %v1105_v55 = vpop.permute.xlu0 %1104 }
  0xfd   :  { %v1113_v59 = vsel %vm1112_vm9, %v1105_v55, %v1107_v51 }
  0xfe   :  { %v1130_v1 = vmul.f32 %v3067_v52, %v1113_v59 }
 0x100   :  { %2519 = vmatpush.msk.msra.mxu0 %vm122_vm2, %v1130_v1 }
 0x101   :  { %2520 = vmatmul.msk.f32.vlgmr.msra.gmra.mxu0 %vm119_vm3, %v1135_v39 }
 0x10c   :  { %v212_v62 = vpop.f32.mrf.mxu3 }
 0x114   :  { %v306_v17 = vpop.f32.mrf.mxu3 }
 0x115   :  { %v307_v35 = vadd.f32 %v306_v17, %v212_v62 }
 0x116   :  { %v152_v6 = vpop.f32.mrf.mxu0 }
 0x11e   :  { %v246_v14 = vpop.f32.mrf.mxu0 }
 0x11f   :  { %v247_v2 = vadd.f32 %v246_v14, %v152_v6 }
 0x126   :  { %v172_v60 = vpop.f32.mrf.mxu1 }
 0x128   :  { %v439_v15 = vpop.f32.mrf.mxu3 }
 0x129   :  { %v445_v18 = vadd.f32 %v439_v15, %v307_v35 }
 0x12c   :  { %v192_v5 = vpop.f32.mrf.mxu2 }
 0x12e   :  { %v266_v16 = vpop.f32.mrf.mxu1 }
 0x12f   :  { %v267_v1 = vadd.f32 %v266_v16, %v172_v60 }
 0x134   :  { %v286_v63 = vpop.f32.mrf.mxu2 }
 0x135   :  { %v287_v56 = vadd.f32 %v286_v63, %v192_v5 }
 0x136   :  { %v399_v12 = vpop.f32.mrf.mxu1  ;;  %v379_v33 = vpop.f32.mrf.mxu0 }
 0x137   :  { %v443_v47 = vadd.f32 %v399_v12, %v267_v1  ;;  %v442_v30 = vadd.f32 %v379_v33, %v247_v2 }
 0x138   :  { %v576_v36 = vpop.f32.mrf.mxu3 }
 0x139   :  { %v582_v8 = vadd.f32 %v576_v36, %v445_v18 }
 0x13d   :  { %v419_v13 = vpop.f32.mrf.mxu2 }
 0x13e   :  { %v444_v57 = vadd.f32 %v419_v13, %v287_v56 }
 0x140   :  { %v679_v32 = vpop.f32.mrf.mxu3 }
 0x141   :  { %v685_v60 = vadd.f32 %v679_v32, %v582_v8  ;;  %v3100_v32 = vld [vmem:[%s3426_s5] sm:$0xf] }
 0x142   :  { %1679 = vrot.lane.b32.xlu2 %v3100_v32, %s2632_s16 }
 0x145   :  { %v556_v34 = vpop.f32.mrf.mxu2 }
 0x146   :  { %v536_v26 = vpop.f32.mrf.mxu1  ;;  %v516_v37 = vpop.f32.mrf.mxu0  ;;  %v581_v31 = vadd.f32 %v556_v34, %v444_v57 }
 0x147   :  { %v580_v29 = vadd.f32 %v536_v26, %v443_v47  ;;  %v579_v7 = vadd.f32 %v516_v37, %v442_v30 }
 0x14a   :  { %1896 = vrot.lane.b32.xlu2 %v3100_v32, %s2633_s17 }
 0x14d   :  { %v659_v61 = vpop.f32.mrf.mxu2 }
 0x14e   :  { %v639_v38 = vpop.f32.mrf.mxu1  ;;  %v619_v39 = vpop.f32.mrf.mxu0  ;;  %v684_v54 = vadd.f32 %v659_v61, %v581_v31 }
 0x14f   :  { %v816_v51 = vpop.f32.mrf.mxu3  ;;  %v683_v42 = vadd.f32 %v639_v38, %v580_v29  ;;  %v682_v16 = vadd.f32 %v619_v39, %v579_v7  ;;  %v2640_v39 = vmov 0  }
 0x150   :  { %v822_v62 = vadd.f32 %v816_v51, %v685_v60  ;;  %2615 = vset.pattern.permute.xlu2 %v2640_v39  ;;  %2616 = vset.pattern.permute.xlu0 %v2640_v39 }
 0x155   :  { %v796_v46 = vpop.f32.mrf.mxu2 }
 0x156   :  { %v776_v44 = vpop.f32.mrf.mxu1  ;;  %v756_v58 = vpop.f32.mrf.mxu0  ;;  %v821_v11 = vadd.f32 %v796_v46, %v684_v54 }
 0x157   :  { %v953_v59 = vpop.f32.mrf.mxu3  ;;  %v820_v53 = vadd.f32 %v776_v44, %v683_v42  ;;  %v819_v6 = vadd.f32 %v756_v58, %v682_v16 }
 0x158   :  { %v959_v35 = vadd.f32 %v953_v59, %v822_v62 }
 0x15d   :  { %v933_v55 = vpop.f32.mrf.mxu2 }
 0x15e   :  { %v913_v40 = vpop.f32.mrf.mxu1  ;;  %v958_v56 = vadd.f32 %v933_v55, %v821_v11 }
 0x15f   :  { %v1090_v45 = vpop.f32.mrf.mxu3  ;;  %v957_v5 = vadd.f32 %v913_v40, %v820_v53 }
 0x160   :  { %v1096_v30 = vadd.f32 %v1090_v45, %v959_v35 }
 0x165   :  { %v1070_v10 = vpop.f32.mrf.mxu2 }
 0x166   :  { %v893_v28 = vpop.f32.mrf.mxu0  ;;  %v1095_v2 = vadd.f32 %v1070_v10, %v958_v56 }
 0x167   :  { %v956_v57 = vadd.f32 %v893_v28, %v819_v6  ;;  %v1234_v6 = vld [vmem:[%s3427_s3] sm:$0xf] }
 0x16e   :  { %v1050_v41 = vpop.f32.mrf.mxu1 }
 0x16f   :  { %v1094_v47 = vadd.f32 %v1050_v41, %v957_v5 }
 0x172   :  { %v1227_v18 = vpop.f32.mrf.mxu3 }
 0x173   :  { %v3078_v7 = vadd.f32 %v1227_v18, %v1096_v30 }
 0x174   :  { %v1207_v17 = vpop.f32.mrf.mxu2 }
 0x175   :  { %v3076_v31 = vadd.f32 %v1207_v17, %v1095_v2  ;;  %v1248_v12 = vmul.f32 %v3078_v7, %v3078_v7  ;;  %v1241_v33 = vsel %vm122_vm2, %v3078_v7, 0.0  ;;  %v1235_v2 = vld [vmem:[%s3428_s4] sm:$0xf] }
 0x176   :  { %v1030_v25 = vpop.f32.mrf.mxu0 }
 0x177   :  { %v1093_v42 = vadd.f32 %v1030_v25, %v956_v57  ;;  %v1247_v11 = vmul.f32 %v3076_v31, %v3076_v31  ;;  %v1239_v25 = vsel %vm122_vm2, %v3076_v31, 0.0  ;;  %v1254_v38 = vsel %vm122_vm2, %v1248_v12, 0.0 }
 0x178   :  { %v1187_v63 = vpop.f32.mrf.mxu1 }
 0x179   :  { %v3074_v29 = vadd.f32 %v1187_v63, %v1094_v47  ;;  %v1252_v34 = vsel %vm122_vm2, %v1247_v11, 0.0 }
 0x17b   :  { %v1246_v53 = vmul.f32 %v3074_v29, %v3074_v29  ;;  %v1237_v10 = vsel %vm122_vm2, %v3074_v29, 0.0 }
 0x17d   :  { %v1250_v14 = vsel %vm122_vm2, %v1246_v53, 0.0 }
 0x17e   :  { %v1167_v8 = vpop.f32.mrf.mxu0 }
 0x17f   :  { %v1230_v54 = vadd.f32 %v1167_v8, %v1093_v42 }
 0x181   :  { %v1236_v28 = vsel %vm122_vm2, %v1230_v54, 0.0  ;;  %v1245_v41 = vmul.f32 %v1230_v54, %v1230_v54 }
 0x182   :  { %v1238_v45 = vadd.f32 %v1237_v10, %v1236_v28 }
 0x183   :  { %v1249_v13 = vsel %vm122_vm2, %v1245_v41, 0.0 }
 0x184   :  { %v1240_v15 = vadd.f32 %v1239_v25, %v1238_v45  ;;  %v1251_v26 = vadd.f32 %v1250_v14, %v1249_v13 }
 0x186   :  { %v1242_v36 = vadd.f32 %v1241_v33, %v1240_v15  ;;  %v1253_v37 = vadd.f32 %v1252_v34, %v1251_v26 }
 0x188   :  { %1243 = vadd.xlane.f32.xlu0 %v1242_v36  ;;  %v1255_v61 = vadd.f32 %v1254_v38, %v1253_v37 }
 0x18a   :  { %1256 = vadd.xlane.f32.xlu1 %v1255_v61 }
 0x19c   :  { %1347 = vrot.lane.b32.xlu0 %v3100_v32, %s2625_s9  ;;  %v3120_v18 = vpop.permute.xlu2 %1679 }
 0x1a3   :  { %1558 = vrot.lane.b32.xlu1 %v3100_v32, %s2630_s14 }
 0x1a4   :  { %2017 = vrot.lane.b32.xlu0 %v3100_v32, %s2636_s20  ;;  %v3122_v30 = vpop.permute.xlu2 %1896 }
 0x1ab   :  { %1779 = vrot.lane.b32.xlu1 %v3100_v32, %s2629_s13 }
 0x1fb   :  { %v1244_v44 = vpop.xlane.xlu0 %1243 }
 0x1fc   :  { %v1258_v46 = vmul.f32 0.001953125, %v1244_v44 }
 0x1fd   :  { %v1257_v51 = vpop.xlane.xlu1 %1256 }
 0x1fe   :  { %v1260_v58 = vmul.f32 %v1258_v46, %v1258_v46  ;;  %v1259_v40 = vmul.f32 0.001953125, %v1257_v51 }
 0x200   :  { %v1261_v55 = vsub.f32 %v1259_v40, %v1260_v58 }
 0x202   :  { %v1262_v59 = vmax.f32 %v1261_v55, 0.0 }
 0x204   :  { %v1263_v1 = vadd.f32 1e-05, %v1262_v59 }
 0x206   :  { %2621 = vrsqrt.f32 %v1263_v1  ;;  %vm1270_vm11 = vweird.f32 %v1263_v1 }
 0x20c   :  { %v2622_v60 = vpop.eup %2621 }
 0x20d   :  { %v1265_v16 = vmul.f32 %v2622_v60, %v1263_v1  ;;  %vm1271_vm10 = vweird.f32 %v2622_v60 }
 0x20e   :  { %vm1272_vm12 = vmor %vm1270_vm11, %vm1271_vm10  ;;  %v1348_v15 = vpop.permute.xlu0 %1347 }
 0x20f   :  { %v1266_v5 = vmul.f32 %v2622_v60, %v1265_v16 }
 0x211   :  { %v1267_v63 = vmul.f32 0.5, %v1266_v5 }
 0x213   :  { %v1268_v62 = vsub.f32 1.5, %v1267_v63 }
 0x215   :  { %v1269_v56 = vmul.f32 %v2622_v60, %v1268_v62 }
 0x216   :  { %v3210_v37 = vpop.permute.xlu0 %2017 }
 0x217   :  { %v1273_v47 = vsel %vm1272_vm12, %v2622_v60, %v1269_v56 }
 0x218   :  { %v1274_v17 = vmul.f32 %v1273_v47, %v1234_v6 }
 0x21a   :  { %1279 = vperm.xlu2 %2615, %v1274_v17   ;;  %v1275_v35 = vmul.f32 %v1274_v17, %v1258_v46  ;;  %v3452_v17 = vperm.slane %v2794_v48, 2 }
 0x21c   :  { %v1276_v57 = vsub.f32 %v1235_v2, %v1275_v35 }
 0x222   :  { %1288 = vperm.xlu2 %2615, %v1276_v57  }
 0x274   :  { %v1280_v42 = vpop.permute.xlu2 %1279 }
 0x275   :  { %v1282_v8 = vmul.f32 %v1280_v42, %v1230_v54  ;;  %v1283_v53 = vmul.f32 %v1280_v42, %v3074_v29  ;;  %v1284_v25 = vmul.f32 %v1280_v42, %v3076_v31  ;;  %v1285_v12 = vmul.f32 %v1280_v42, %v3078_v7  ;;  %v3197_v7 = vpop.permute.xlu1 %1558 }
 0x276   :  { %v3453_v42 = vperm.slane %v2851_v19, 2 }
 0x27c   :  { %v1289_v11 = vpop.permute.xlu2 %1288 }
 0x27d   :  { %v1291_v10 = vadd.f32 %v1289_v11, %v1282_v8  ;;  %v1292_v28 = vadd.f32 %v1289_v11, %v1283_v53  ;;  %v1293_v29 = vadd.f32 %v1289_v11, %v1284_v25  ;;  %v1294_v54 = vadd.f32 %v1289_v11, %v1285_v12  ;;  %v3208_v36 = vpop.permute.xlu1 %1779 }
 0x27f   :  { %v3125_v41 = vmax.f32 %v1291_v10, 0.0  ;;  %v3127_v45 = vmax.f32 %v1292_v28, 0.0  ;;  %v3137_v13 = vmax.f32 %v1293_v29, 0.0  ;;  %v3139_v14 = vmax.f32 %v1294_v54, 0.0 }
 0x280   :  { %v3454_v29 = vperm.slane %v2822_v0, 2 }
 0x281   :  { %1309 = vrot.lane.b32.xlu1 %v3127_v45, %s2626_s12  ;;  %1330 = vrot.lane.b32.xlu2 %v3127_v45, %s2627_s2 }
 0x282   :  { %1307 = vrot.lane.b32.xlu0 %v3125_v41, %s2626_s12 }
 0x289   :  { %1544 = vrot.lane.b32.xlu1 %v3137_v13, %s2628_s1  ;;  %1332 = vrot.lane.b32.xlu2 %v3137_v13, %s2627_s2 }
 0x28a   :  { %1537 = vrot.lane.b32.xlu0 %v3139_v14, %s2628_s1 }
 0x291   :  { %1658 = vrot.lane.b32.xlu1 %v3139_v14, %s2631_s15  ;;  %1325 = vrot.lane.b32.xlu2 %v3139_v14, %s2627_s2 }
 0x292   :  { %1663 = vrot.lane.b32.xlu0 %v3127_v45, %s2631_s15 }
 0x299   :  { %1875 = vrot.lane.b32.xlu1 %v3125_v41, %s2634_s18  ;;  %1328 = vrot.lane.b32.xlu2 %v3125_v41, %s2627_s2 }
 0x29a   :  { %1661 = vrot.lane.b32.xlu0 %v3125_v41, %s2631_s15 }
 0x2a1   :  { %2000 = vrot.lane.b32.xlu1 %v3137_v13, %s2635_s19  ;;  %1311 = vrot.lane.b32.xlu2 %v3137_v13, %s2626_s12 }
 0x2a2   :  { %1879 = vrot.lane.b32.xlu0 %v3137_v13, %s2634_s18 }
 0x2a9   :  { %1998 = vrot.lane.b32.xlu1 %v3127_v45, %s2635_s19  ;;  %1301 = vrot.lane.b32.xlu2 %v3139_v14, %s2626_s12 }
 0x2aa   :  { %1877 = vrot.lane.b32.xlu0 %v3127_v45, %s2634_s18 }
 0x2b1   :  { %2123 = vrot.lane.b32.xlu1 %v3139_v14, %s2629_s13  ;;  %1542 = vrot.lane.b32.xlu2 %v3127_v45, %s2628_s1 }
 0x2b2   :  { %2002 = vrot.lane.b32.xlu0 %v3139_v14, %s2635_s19 }
 0x2b9   :  { %2138 = vrot.lane.b32.xlu1 %v3100_v32, %s2637_s21  ;;  %1540 = vrot.lane.b32.xlu2 %v3125_v41, %s2628_s1 }
 0x2ba   :  { %2117 = vrot.lane.b32.xlu0 %v3125_v41, %s2629_s13 }
 0x2c1   :  { %2238 = vrot.lane.b32.xlu1 %v3125_v41, %s2638_s22  ;;  %1665 = vrot.lane.b32.xlu2 %v3137_v13, %s2631_s15 }
 0x2c2   :  { %2242 = vrot.lane.b32.xlu0 %v3137_v13, %s2638_s22 }
 0x2c9   :  { %1881 = vrot.lane.b32.xlu2 %v3139_v14, %s2634_s18 }
 0x2ca   :  { %2240 = vrot.lane.b32.xlu0 %v3127_v45, %s2638_s22 }
 0x2d1   :  { %1996 = vrot.lane.b32.xlu2 %v3125_v41, %s2635_s19 }
 0x2d9   :  { %2121 = vrot.lane.b32.xlu2 %v3137_v13, %s2629_s13 }
 0x2db   :  { %v1331_v31 = vpop.permute.xlu2 %1330 }
 0x2e1   :  { %2119 = vrot.lane.b32.xlu2 %v3127_v45, %s2629_s13 }
 0x2e3   :  { %v1333_v26 = vpop.permute.xlu2 %1332 }
 0x2e4   :  { %v1335_v33 = vsel %vm99_vm1, %v1331_v31, %v1333_v26 }
 0x2e5   :  { %v1344_v34 = vmul.f32 %v1335_v33, %v110_v22 }
 0x2e7   :  { %2531 = vmatpush.msk.msrb.mxu2 %vm122_vm2, %v1344_v34  ;;  %v3457_v34 = vperm.slane %v2856_v20, 3 }
 0x2e8   :  { %2532 = vmatmul.msk.f32.vlgmr.msrb.gmra.mxu2 %vm119_vm3, %v1348_v15 }
 0x2e9   :  { %2244 = vrot.lane.b32.xlu2 %v3139_v14, %s2638_s22 }
 0x2eb   :  { %v1326_v38 = vpop.permute.xlu2 %1325 }
 0x2ec   :  { %v1336_v61 = vsel %vm99_vm1, %v1333_v26, %v1326_v38  ;;  %v3456_v26 = vperm.slane %v2822_v0, 3 }
 0x2ed   :  { %v1345_v39 = vmul.f32 %v1336_v61, %v111_v50 }
 0x2ef   :  { %2533 = vmatpush.msk.msrb.mxu3 %vm122_vm2, %v1345_v39 }
 0x2f0   :  { %2534 = vmatmul.msk.f32.vlgmr.msrb.gmra.mxu3 %vm119_vm3, %v1348_v15 }
 0x2f1   :  { %2259 = vrot.lane.b32.xlu2 %v3100_v32, %s2639_s27 }
 0x2f3   :  { %v1310_v22 = vpop.permute.xlu1 %1309  ;;  %v1329_v44 = vpop.permute.xlu2 %1328 }
 0x2f4   :  { %v1334_v46 = vsel %vm99_vm1, %v1329_v44, %v1331_v31  ;;  %v1341_v51 = vsel %vm99_vm1, %v1326_v38, %v1329_v44  ;;  %v1308_v58 = vpop.permute.xlu0 %1307  ;;  %v3455_v31 = vperm.slane %v2856_v20, 2 }
 0x2f5   :  { %v1342_v40 = vmul.f32 %v1341_v51, %v108_v4  ;;  %v1343_v50 = vmul.f32 %v1334_v46, %v109_v21  ;;  %v1313_v55 = vsel %vm62_vm0, %v1308_v58, %v1310_v22  ;;  %v3458_v46 = vperm.slane %v2851_v19, 3 }
 0x2f6   :  { %v1322_v59 = vmul.f32 %v1313_v55, %v72_v24  ;;  %v3460_v55 = vperm.slane %v2822_v0, 5 }
 0x2f7   :  { %2527 = vmatpush.msk.msrb.mxu0 %vm122_vm2, %v1342_v40  ;;  %2529 = vmatpush.msk.msrb.mxu1 %vm122_vm2, %v1343_v50 }
 0x2f8   :  { %2528 = vmatmul.msk.f32.vlgmr.msrb.gmra.mxu0 %vm119_vm3, %v1348_v15  ;;  %2530 = vmatmul.msk.f32.vlgmr.msrb.gmra.mxu1 %vm119_vm3, %v1348_v15 }
 0x2f9   :  { %2537 = vmatpush.msk.msra.mxu1 %vm122_vm2, %v1322_v59  ;;  %v3461_v59 = vperm.slane %v2856_v20, 5 }
 0x2fb   :  { %v1545_v1 = vpop.permute.xlu1 %1544  ;;  %v1312_v4 = vpop.permute.xlu2 %1311 }
 0x2fc   :  { %v1314_v60 = vsel %vm62_vm0, %v1310_v22, %v1312_v4  ;;  %v1538_v21 = vpop.permute.xlu0 %1537 }
 0x2fd   :  { %v1323_v16 = vmul.f32 %v1314_v60, %v73_v23  ;;  %v1548_v63 = vsel %vm329_vm4, %v1545_v1, %v1538_v21 }
 0x2fe   :  { %v1557_v35 = vmul.f32 %v1548_v63, %v3452_v17 }
 0x2ff   :  { %2539 = vmatpush.msk.msra.mxu2 %vm122_vm2, %v1323_v16 }
 0x300   :  { %2538 = vmatmul.msk.f32.vlgmr.msra.gmra.mxu1 %vm119_vm3, %v3100_v32  ;;  %2540 = vmatmul.msk.f32.vlgmr.msra.gmra.mxu2 %vm119_vm3, %v3100_v32 }
 0x303   :  { %v1659_v24 = vpop.permute.xlu1 %1658  ;;  %v1302_v5 = vpop.permute.xlu2 %1301 }
 0x304   :  { %v1315_v62 = vsel %vm62_vm0, %v1312_v4, %v1302_v5  ;;  %v1320_v6 = vsel %vm62_vm0, %v1302_v5, %v1308_v58  ;;  %v1664_v56 = vpop.permute.xlu0 %1663 }
 0x305   :  { %v1321_v23 = vmul.f32 %v1320_v6, %v71_v3  ;;  %v1324_v47 = vmul.f32 %v1315_v62, %v74_v49  ;;  %v3464_v62 = vperm.slane %v2851_v19, 6 }
 0x307   :  { %2535 = vmatpush.msk.msra.mxu0 %vm122_vm2, %v1321_v23  ;;  %2541 = vmatpush.msk.msra.mxu3 %vm122_vm2, %v1324_v47 }
 0x308   :  { %2536 = vmatmul.msk.f32.vlgmr.msra.gmra.mxu0 %vm119_vm3, %v3100_v32  ;;  %2542 = vmatmul.msk.f32.vlgmr.msra.gmra.mxu3 %vm119_vm3, %v3100_v32 }
 0x309   :  { %2549 = vmatpush.msk.msrb.mxu3 %vm122_vm2, %v1557_v35 }
 0x30b   :  { %v1876_v2 = vpop.permute.xlu1 %1875  ;;  %v1543_v3 = vpop.permute.xlu2 %1542 }
 0x30c   :  { %v1547_v57 = vsel %vm329_vm4, %v1543_v3, %v1545_v1  ;;  %v1662_v49 = vpop.permute.xlu0 %1661 }
 0x30d   :  { %v1556_v8 = vmul.f32 %v1547_v57, %v3453_v42  ;;  %v1667_v32 = vsel %vm466_vm5, %v1662_v49, %v1664_v56  ;;  %v1674_v11 = vsel %vm466_vm5, %v1659_v24, %v1662_v49  ;;  %v3466_v57 = vperm.slane %v2822_v0, 6 }
 0x30e   :  { %v1675_v33 = vmul.f32 %v1674_v11, %v3456_v26  ;;  %v1676_v38 = vmul.f32 %v1667_v32, %v3457_v34  ;;  %v3467_v42 = vperm.slane %v2794_v48, 6 }
 0x30f   :  { %2547 = vmatpush.msk.msrb.mxu2 %vm122_vm2, %v1556_v8 }
 0x310   :  { %2548 = vmatmul.msk.f32.vlgmr.msrb.gmra.mxu2 %vm119_vm3, %v3197_v7  ;;  %2550 = vmatmul.msk.f32.vlgmr.msrb.gmra.mxu3 %vm119_vm3, %v3197_v7 }
 0x313   :  { %v1541_v53 = vpop.permute.xlu2 %1540  ;;  %v2001_v10 = vpop.permute.xlu1 %2000 }
 0x314   :  { %v1546_v28 = vsel %vm329_vm4, %v1541_v53, %v1543_v3  ;;  %v1553_v25 = vsel %vm329_vm4, %v1538_v21, %v1541_v53  ;;  %v1880_v12 = vpop.permute.xlu0 %1879 }
 0x315   :  { %v1554_v54 = vmul.f32 %v1553_v25, %v3454_v29  ;;  %v1555_v15 = vmul.f32 %v1546_v28, %v3455_v31  ;;  %v3469_v25 = vperm.slane %v2851_v19, 7 }
 0x317   :  { %2543 = vmatpush.msk.msrb.mxu0 %vm122_vm2, %v1554_v54  ;;  %2545 = vmatpush.msk.msrb.mxu1 %vm122_vm2, %v1555_v15  ;;  %v3470_v15 = vperm.slane %v2822_v0, 7 }
 0x318   :  { %2544 = vmatmul.msk.f32.vlgmr.msrb.gmra.mxu0 %vm119_vm3, %v3197_v7  ;;  %2546 = vmatmul.msk.f32.vlgmr.msrb.gmra.mxu1 %vm119_vm3, %v3197_v7  ;;  %v3459_v7 = vperm.slane %v2794_v48, 3 }
 0x319   :  { %2551 = vmatpush.msk.msra.mxu0 %vm122_vm2, %v1675_v33  ;;  %2553 = vmatpush.msk.msra.mxu1 %vm122_vm2, %v1676_v38  ;;  %v3471_v33 = vperm.slane %v2856_v20, 7 }
 0x31b   :  { %2559 = vmatpush.msk.msrb.mxu0 %vm122_vm2, %v3125_v41  ;;  %2561 = vmatpush.msk.msrb.mxu1 %vm122_vm2, %v3127_v45  ;;  %v1666_v61 = vpop.permute.xlu2 %1665  ;;  %v1999_v50 = vpop.permute.xlu1 %1998 }
 0x31c   :  { %v1668_v39 = vsel %vm466_vm5, %v1664_v56, %v1666_v61  ;;  %v1669_v22 = vsel %vm466_vm5, %v1666_v61, %v1659_v24  ;;  %v1878_v44 = vpop.permute.xlu0 %1877  ;;  %v2005_v24 = vsel %vm838_vm7, %v1999_v50, %v2001_v10  ;;  %v3465_v56 = vperm.slane %v2856_v20, 6 }
 0x31d   :  { %v1677_v51 = vmul.f32 %v1668_v39, %v3458_v46  ;;  %v1678_v58 = vmul.f32 %v1669_v22, %v3459_v7  ;;  %v1883_v40 = vsel %vm701_vm6, %v1876_v2, %v1878_v44  ;;  %v1884_v41 = vsel %vm701_vm6, %v1878_v44, %v1880_v12 }
 0x31e   :  { %v1892_v45 = vmul.f32 %v1883_v40, %v3460_v55  ;;  %v1893_v1 = vmul.f32 %v1884_v41, %v3461_v59  ;;  %v2014_v23 = vmul.f32 %v2005_v24, %v3465_v56 }
 0x31f   :  { %2555 = vmatpush.msk.msra.mxu2 %vm122_vm2, %v1677_v51  ;;  %2557 = vmatpush.msk.msra.mxu3 %vm122_vm2, %v1678_v58 }
 0x320   :  { %2552 = vmatmul.msk.f32.vlgmr.msra.gmra.mxu0 %vm119_vm3, %v3120_v18  ;;  %2554 = vmatmul.msk.f32.vlgmr.msra.gmra.mxu1 %vm119_vm3, %v3120_v18 }
 0x321   :  { %2556 = vmatmul.msk.f32.vlgmr.msra.gmra.mxu2 %vm119_vm3, %v3120_v18  ;;  %2558 = vmatmul.msk.f32.vlgmr.msra.gmra.mxu3 %vm119_vm3, %v3120_v18  ;;  %v3462_v18 = vperm.slane %v2851_v19, 5 }
 0x322   :  { %2563 = vmatpush.msk.msrb.mxu2 %vm122_vm2, %v3137_v13  ;;  %2565 = vmatpush.msk.msrb.mxu3 %vm122_vm2, %v3139_v14  ;;  %v3463_v13 = vperm.slane %v2794_v48, 5 }
 0x323   :  { %2567 = vmatpush.msk.msra.mxu0 %vm122_vm2, %v1892_v45  ;;  %2569 = vmatpush.msk.msra.mxu1 %vm122_vm2, %v1893_v1  ;;  %v1882_v4 = vpop.permute.xlu2 %1881  ;;  %v2124_v47 = vpop.permute.xlu1 %2123 }
 0x324   :  { %v1885_v60 = vsel %vm701_vm6, %v1880_v12, %v1882_v4  ;;  %v1891_v21 = vsel %vm701_vm6, %v1882_v4, %v1876_v2  ;;  %v2003_v16 = vpop.permute.xlu0 %2002 }
 0x325   :  { %v1894_v5 = vmul.f32 %v1885_v60, %v3462_v18  ;;  %v1895_v63 = vmul.f32 %v1891_v21, %v3463_v13  ;;  %v2006_v14 = vsel %vm838_vm7, %v2001_v10, %v2003_v16 }
 0x326   :  { %v2015_v6 = vmul.f32 %v2006_v14, %v3464_v62 }
 0x327   :  { %2571 = vmatpush.msk.msra.mxu2 %vm122_vm2, %v1894_v5  ;;  %2573 = vmatpush.msk.msra.mxu3 %vm122_vm2, %v1895_v63 }
 0x328   :  { %2560 = vmatmul.msk.f32.vlgmr.msrb.gmra.mxu0 %vm119_vm3, %v3208_v36  ;;  %2562 = vmatmul.msk.f32.vlgmr.msrb.gmra.mxu1 %vm119_vm3, %v3208_v36 }
 0x329   :  { %2564 = vmatmul.msk.f32.vlgmr.msrb.gmra.mxu2 %vm119_vm3, %v3208_v36  ;;  %2566 = vmatmul.msk.f32.vlgmr.msrb.gmra.mxu3 %vm119_vm3, %v3208_v36  ;;  %v3468_v36 = vperm.slane %v2794_v48, 7 }
 0x32a   :  { %2577 = vmatpush.msk.msrb.mxu1 %vm122_vm2, %v2014_v23  ;;  %2579 = vmatpush.msk.msrb.mxu2 %vm122_vm2, %v2015_v6 }
 0x32b   :  { %v1997_v17 = vpop.permute.xlu2 %1996  ;;  %v2139_v11 = vpop.permute.xlu1 %2138 }
 0x32c   :  { %v2004_v35 = vsel %vm838_vm7, %v1997_v17, %v1999_v50  ;;  %v2012_v2 = vsel %vm838_vm7, %v2003_v16, %v1997_v17  ;;  %v2118_v3 = vpop.permute.xlu0 %2117 }
 0x32d   :  { %v2013_v49 = vmul.f32 %v2004_v35, %v3466_v57  ;;  %v2016_v8 = vmul.f32 %v2012_v2, %v3467_v42  ;;  %v2133_v53 = vsel %vm975_vm8, %v2124_v47, %v2118_v3 }
 0x32e   :  { %v2137_v32 = vmul.f32 %v2133_v53, %v3468_v36 }
 0x32f   :  { %2575 = vmatpush.msk.msrb.mxu0 %vm122_vm2, %v2013_v49  ;;  %2581 = vmatpush.msk.msrb.mxu3 %vm122_vm2, %v2016_v8 }
 0x330   :  { %2568 = vmatmul.msk.f32.vlgmr.msra.gmra.mxu0 %vm119_vm3, %v3122_v30  ;;  %2570 = vmatmul.msk.f32.vlgmr.msra.gmra.mxu1 %vm119_vm3, %v3122_v30 }
 0x331   :  { %2572 = vmatmul.msk.f32.vlgmr.msra.gmra.mxu2 %vm119_vm3, %v3122_v30  ;;  %2574 = vmatmul.msk.f32.vlgmr.msra.gmra.mxu3 %vm119_vm3, %v3122_v30 }
 0x332   :  { %2589 = vmatpush.msk.msra.mxu3 %vm122_vm2, %v2137_v32 }
 0x333   :  { %v2122_v48 = vpop.permute.xlu2 %2121  ;;  %v2239_v29 = vpop.permute.xlu1 %2238 }
 0x334   :  { %v2127_v10 = vsel %vm975_vm8, %v2122_v48, %v2124_v47  ;;  %v2243_v28 = vpop.permute.xlu0 %2242 }
 0x335   :  { %v2136_v12 = vmul.f32 %v2127_v10, %v3469_v25 }
 0x337   :  { %2587 = vmatpush.msk.msra.mxu2 %vm122_vm2, %v2136_v12 }
 0x338   :  { %2576 = vmatmul.msk.f32.vlgmr.msrb.gmra.mxu0 %vm119_vm3, %v3210_v37  ;;  %2578 = vmatmul.msk.f32.vlgmr.msrb.gmra.mxu1 %vm119_vm3, %v3210_v37 }
 0x339   :  { %2580 = vmatmul.msk.f32.vlgmr.msrb.gmra.mxu2 %vm119_vm3, %v3210_v37  ;;  %2582 = vmatmul.msk.f32.vlgmr.msrb.gmra.mxu3 %vm119_vm3, %v3210_v37 }
 0x33b   :  { %v2120_v30 = vpop.permute.xlu2 %2119 }
 0x33c   :  { %v2125_v54 = vsel %vm975_vm8, %v2118_v3, %v2120_v30  ;;  %v2126_v19 = vsel %vm975_vm8, %v2120_v30, %v2122_v48  ;;  %v2241_v31 = vpop.permute.xlu0 %2240 }
 0x33d   :  { %v2134_v26 = vmul.f32 %v2125_v54, %v3470_v15  ;;  %v2135_v34 = vmul.f32 %v2126_v19, %v3471_v33  ;;  %v2246_v38 = vsel %vm1112_vm9, %v2239_v29, %v2241_v31  ;;  %v2247_v61 = vsel %vm1112_vm9, %v2241_v31, %v2243_v28 }
 0x33e   :  { %v2255_v39 = vmul.f32 %v3067_v52, %v2246_v38  ;;  %v2256_v37 = vmul.f32 %v3053_v43, %v2247_v61 }
 0x33f   :  { %2583 = vmatpush.msk.msra.mxu0 %vm122_vm2, %v2134_v26  ;;  %2585 = vmatpush.msk.msra.mxu1 %vm122_vm2, %v2135_v34 }
 0x340   :  { %2584 = vmatmul.msk.f32.vlgmr.msra.gmra.mxu0 %vm119_vm3, %v2139_v11  ;;  %2586 = vmatmul.msk.f32.vlgmr.msra.gmra.mxu1 %vm119_vm3, %v2139_v11 }
 0x341   :  { %2588 = vmatmul.msk.f32.vlgmr.msra.gmra.mxu2 %vm119_vm3, %v2139_v11  ;;  %2590 = vmatmul.msk.f32.vlgmr.msra.gmra.mxu3 %vm119_vm3, %v2139_v11 }
 0x342   :  { %2591 = vmatpush.msk.msrb.mxu0 %vm122_vm2, %v2255_v39  ;;  %2593 = vmatpush.msk.msrb.mxu1 %vm122_vm2, %v2256_v37 }
 0x343   :  { %v2245_v0 = vpop.permute.xlu2 %2244 }
 0x344   :  { %v2248_v20 = vsel %vm1112_vm9, %v2243_v28, %v2245_v0  ;;  %v2254_v43 = vsel %vm1112_vm9, %v2245_v0, %v2239_v29 }
 0x345   :  { %v2257_v52 = vmul.f32 %v3034_v27, %v2248_v20  ;;  %v2258_v22 = vmul.f32 %v3021_v9, %v2254_v43 }
 0x347   :  { %2595 = vmatpush.msk.msrb.mxu2 %vm122_vm2, %v2257_v52  ;;  %2597 = vmatpush.msk.msrb.mxu3 %vm122_vm2, %v2258_v22 }
 0x34b   :  { %v2260_v44 = vpop.permute.xlu2 %2259 }
 0x34c   :  { %2592 = vmatmul.msk.f32.vlgmr.msrb.gmra.mxu0 %vm119_vm3, %v2260_v44  ;;  %2594 = vmatmul.msk.f32.vlgmr.msrb.gmra.mxu1 %vm119_vm3, %v2260_v44 }
 0x34d   :  { %2596 = vmatmul.msk.f32.vlgmr.msrb.gmra.mxu2 %vm119_vm3, %v2260_v44  ;;  %2598 = vmatmul.msk.f32.vlgmr.msrb.gmra.mxu3 %vm119_vm3, %v2260_v44 }
 0x36b   :  { %v1420_v58 = vpop.f32.mrf.mxu2 }
 0x373   :  { %v1440_v7 = vpop.f32.mrf.mxu3 }
 0x375   :  { %v1400_v46 = vpop.f32.mrf.mxu1  ;;  %v1380_v51 = vpop.f32.mrf.mxu0 }
 0x37d   :  { %v1494_v27 = vpop.f32.mrf.mxu1 }
 0x37e   :  { %v1495_v23 = vadd.f32 %v1494_v27, %v1400_v46 }
 0x383   :  { %v1514_v50 = vpop.f32.mrf.mxu2 }
 0x384   :  { %v1515_v32 = vadd.f32 %v1514_v50, %v1420_v58 }
 0x385   :  { %v1474_v40 = vpop.f32.mrf.mxu0 }
 0x386   :  { %v1475_v47 = vadd.f32 %v1474_v40, %v1380_v51 }
 0x38b   :  { %v1534_v9 = vpop.f32.mrf.mxu3 }
 0x38c   :  { %v1535_v11 = vadd.f32 %v1534_v9, %v1440_v7 }
 0x393   :  { %v1631_v45 = vpop.f32.mrf.mxu2  ;;  %v1651_v59 = vpop.f32.mrf.mxu3 }
 0x394   :  { %v1656_v28 = vadd.f32 %v1631_v45, %v1515_v32  ;;  %v1657_v25 = vadd.f32 %v1651_v59, %v1535_v11 }
 0x395   :  { %v1591_v41 = vpop.f32.mrf.mxu0  ;;  %v1611_v55 = vpop.f32.mrf.mxu1 }
 0x396   :  { %v1654_v17 = vadd.f32 %v1591_v41, %v1475_v47  ;;  %v1655_v35 = vadd.f32 %v1611_v55, %v1495_v23 }
 0x39d   :  { %v1712_v1 = vpop.f32.mrf.mxu0  ;;  %v1732_v4 = vpop.f32.mrf.mxu1 }
 0x39e   :  { %v1775_v57 = vadd.f32 %v1712_v1, %v1654_v17  ;;  %v1776_v49 = vadd.f32 %v1732_v4, %v1655_v35 }
 0x3a4   :  { %v1752_v60 = vpop.f32.mrf.mxu2  ;;  %v1772_v21 = vpop.f32.mrf.mxu3 }
 0x3a5   :  { %v1808_v16 = vpop.f32.mrf.mxu0  ;;  %v1828_v24 = vpop.f32.mrf.mxu1  ;;  %v1777_v29 = vadd.f32 %v1752_v60, %v1656_v28  ;;  %v1778_v54 = vadd.f32 %v1772_v21, %v1657_v25 }
 0x3a6   :  { %v1871_v53 = vadd.f32 %v1808_v16, %v1775_v57  ;;  %v1872_v36 = vadd.f32 %v1828_v24, %v1776_v49 }
 0x3ac   :  { %v1848_v18 = vpop.f32.mrf.mxu2  ;;  %v1868_v5 = vpop.f32.mrf.mxu3 }
 0x3ad   :  { %v1929_v13 = vpop.f32.mrf.mxu0  ;;  %v1949_v63 = vpop.f32.mrf.mxu1  ;;  %v1873_v33 = vadd.f32 %v1848_v18, %v1777_v29  ;;  %v1874_v34 = vadd.f32 %v1868_v5, %v1778_v54  ;;  %v2423_v54 = vld.sshfl [vmem:[#allocation1] sm:$0xff pattern:$0x75316420] }
 0x3ae   :  { %v1992_v48 = vadd.f32 %v1929_v13, %v1871_v53  ;;  %v1993_v10 = vadd.f32 %v1949_v63, %v1872_v36 }
 0x3b4   :  { %v1969_v14 = vpop.f32.mrf.mxu2  ;;  %v1989_v62 = vpop.f32.mrf.mxu3 }
 0x3b5   :  { %v2050_v6 = vpop.f32.mrf.mxu0  ;;  %v2070_v56 = vpop.f32.mrf.mxu1  ;;  %v1994_v0 = vadd.f32 %v1969_v14, %v1873_v33  ;;  %v1995_v20 = vadd.f32 %v1989_v62, %v1874_v34 }
 0x3b6   :  { %v2113_v12 = vadd.f32 %v2050_v6, %v1992_v48  ;;  %v2114_v30 = vadd.f32 %v2070_v56, %v1993_v10  ;;  %v2360_v48 = vld [vmem:[%s3430_s7] sm:$0xf] }
 0x3bc   :  { %v2090_v2 = vpop.f32.mrf.mxu2  ;;  %v2110_v3 = vpop.f32.mrf.mxu3 }
 0x3bd   :  { %v2171_v42 = vpop.f32.mrf.mxu0  ;;  %v2191_v8 = vpop.f32.mrf.mxu1  ;;  %v2115_v43 = vadd.f32 %v2090_v2, %v1994_v0  ;;  %v2116_v52 = vadd.f32 %v2110_v3, %v1995_v20 }
 0x3be   :  { %v2234_v19 = vadd.f32 %v2171_v42, %v2113_v12  ;;  %v2235_v31 = vadd.f32 %v2191_v8, %v2114_v30  ;;  %v2359_v8 = vld [vmem:[%s3429_s6] sm:$0xf] }
 0x3c4   :  { %v2211_v15 = vpop.f32.mrf.mxu2  ;;  %v2231_v26 = vpop.f32.mrf.mxu3 }
 0x3c5   :  { %v2236_v46 = vadd.f32 %v2211_v15, %v2115_v43  ;;  %v2237_v51 = vadd.f32 %v2231_v26, %v2116_v52  ;;  %v2426_v15 = vld.sshfl [vmem:[#allocation1 + $0x18] sm:$0xff pattern:$0x75316420] }
 0x3c9   :  { %v2292_v38 = vpop.f32.mrf.mxu0  ;;  %v2312_v61 = vpop.f32.mrf.mxu1 }
 0x3ca   :  { %v2355_v39 = vadd.f32 %v2292_v38, %v2234_v19  ;;  %v2356_v37 = vadd.f32 %v2312_v61, %v2235_v31  ;;  %v2424_v19 = vld.sshfl [vmem:[#allocation1 + $0x8] sm:$0xff pattern:$0x75316420]  ;;  %v2425_v31 = vld.sshfl [vmem:[#allocation1 + $0x10] sm:$0xff pattern:$0x75316420] }
 0x3cc   :  { %v2370_v22 = vmul.f32 %v2355_v39, %v2355_v39  ;;  %v2371_v44 = vmul.f32 %v2356_v37, %v2356_v37  ;;  %v2361_v7 = vsel %vm122_vm2, %v2355_v39, 0.0  ;;  %v2362_v58 = vsel %vm122_vm2, %v2356_v37, 0.0 }
 0x3cd   :  { %v2363_v45 = vadd.f32 %v2362_v58, %v2361_v7 }
 0x3ce   :  { %v2374_v41 = vsel %vm122_vm2, %v2370_v22, 0.0  ;;  %v2375_v55 = vsel %vm122_vm2, %v2371_v44, 0.0 }
 0x3cf   :  { %v2376_v21 = vadd.f32 %v2375_v55, %v2374_v41 }
 0x3d0   :  { %v2332_v27 = vpop.f32.mrf.mxu2  ;;  %v2352_v40 = vpop.f32.mrf.mxu3 }
 0x3d1   :  { %v2357_v9 = vadd.f32 %v2332_v27, %v2236_v46  ;;  %v2358_v50 = vadd.f32 %v2352_v40, %v2237_v51 }
 0x3d3   :  { %v2372_v59 = vmul.f32 %v2357_v9, %v2357_v9  ;;  %v2364_v1 = vsel %vm122_vm2, %v2357_v9, 0.0  ;;  %v2373_v4 = vmul.f32 %v2358_v50, %v2358_v50  ;;  %v2366_v16 = vsel %vm122_vm2, %v2358_v50, 0.0 }
 0x3d4   :  { %v2365_v60 = vadd.f32 %v2364_v1, %v2363_v45 }
 0x3d5   :  { %v2377_v24 = vsel %vm122_vm2, %v2372_v59, 0.0  ;;  %v2379_v13 = vsel %vm122_vm2, %v2373_v4, 0.0 }
 0x3d6   :  { %v2367_v18 = vadd.f32 %v2366_v16, %v2365_v60  ;;  %v2378_v5 = vadd.f32 %v2377_v24, %v2376_v21 }
 0x3d8   :  { %2368 = vadd.xlane.f32.xlu1 %v2367_v18  ;;  %v2380_v63 = vadd.f32 %v2379_v13, %v2378_v5 }
 0x3da   :  { %2381 = vadd.xlane.f32.xlu0 %v2380_v63 }
 0x44b   :  { %v2369_v14 = vpop.xlane.xlu1 %2368 }
 0x44c   :  { %v2383_v62 = vmul.f32 0.001953125, %v2369_v14 }
 0x44d   :  { %v2382_v6 = vpop.xlane.xlu0 %2381 }
 0x44e   :  { %v2385_v56 = vmul.f32 %v2383_v62, %v2383_v62  ;;  %v2384_v23 = vmul.f32 0.001953125, %v2382_v6 }
 0x450   :  { %v2386_v47 = vsub.f32 %v2384_v23, %v2385_v56 }
 0x452   :  { %v2387_v17 = vmax.f32 %v2386_v47, 0.0 }
 0x454   :  { %v2388_v35 = vadd.f32 1e-05, %v2387_v17 }
 0x456   :  { %2623 = vrsqrt.f32 %v2388_v35  ;;  %vm2395_vm14 = vweird.f32 %v2388_v35 }
 0x45c   :  { %v2624_v2 = vpop.eup %2623 }
 0x45d   :  { %v2390_v3 = vmul.f32 %v2624_v2, %v2388_v35  ;;  %vm2396_vm13 = vweird.f32 %v2624_v2 }
 0x45e   :  { %vm2397_vm15 = vmor %vm2395_vm14, %vm2396_vm13 }
 0x45f   :  { %v2391_v57 = vmul.f32 %v2624_v2, %v2390_v3 }
 0x461   :  { %v2392_v49 = vmul.f32 0.5, %v2391_v57 }
 0x463   :  { %v2393_v42 = vsub.f32 1.5, %v2392_v49 }
 0x465   :  { %v2394_v53 = vmul.f32 %v2624_v2, %v2393_v42 }
 0x467   :  { %v2398_v36 = vsel %vm2397_vm15, %v2624_v2, %v2394_v53 }
 0x468   :  { %v2399_v32 = vmul.f32 %v2398_v36, %v2359_v8 }
 0x46a   :  { %2404 = vperm.xlu2 %2615, %v2399_v32   ;;  %v2400_v11 = vmul.f32 %v2399_v32, %v2383_v62 }
 0x46c   :  { %v2401_v10 = vsub.f32 %v2360_v48, %v2400_v11 }
 0x472   :  { %2413 = vperm.xlu2 %2615, %v2401_v10  }
 0x4c4   :  { %v2405_v28 = vpop.permute.xlu2 %2404 }
 0x4c5   :  { %v2407_v25 = vmul.f32 %v2405_v28, %v2355_v39  ;;  %v2408_v12 = vmul.f32 %v2405_v28, %v2356_v37  ;;  %v2409_v30 = vmul.f32 %v2405_v28, %v2357_v9  ;;  %v2410_v29 = vmul.f32 %v2405_v28, %v2358_v50 }
 0x4cc   :  { %v2414_v26 = vpop.permute.xlu2 %2413 }
 0x4cd   :  { %v2416_v33 = vadd.f32 %v2414_v26, %v2407_v25  ;;  %v2417_v34 = vadd.f32 %v2414_v26, %v2408_v12  ;;  %v2418_v38 = vadd.f32 %v2414_v26, %v2409_v30  ;;  %v2419_v61 = vadd.f32 %v2414_v26, %v2410_v29 }
 0x4cf   :  { %v2431_v0 = vadd.f32 %v2423_v54, %v2416_v33  ;;  %v2432_v20 = vadd.f32 %v2424_v19, %v2417_v34  ;;  %v2433_v43 = vadd.f32 %v2425_v31, %v2418_v38  ;;  %v2434_v52 = vadd.f32 %v2426_v15, %v2419_v61 }
 0x4d1   :  { %v2436_v22 = vmax.f32 %v2432_v20, 0.0  ;;  %v2438_v44 = vmax.f32 %v2434_v52, 0.0  ;;  %v2435_v46 = vmax.f32 %v2431_v0, 0.0  ;;  %v2437_v39 = vmax.f32 %v2433_v43, 0.0 }
 0x4d3   :  { %v2443_v37 = vrot.slane %v2436_v22, 4  ;;  %v2444_v51 = vrot.slane %v2438_v44, 4 }
 0x4d5   :  { %v2445_v7 = vsel %vm122_vm2, %v2435_v46, %v2443_v37  ;;  %v2446_v58 = vsel %vm122_vm2, %v2437_v39, %v2444_v51 }
 0x4d6   :  { %2449 = vst [vmem:[%s3431_s8] sm:$0xff] %v2445_v7 }
 0x4d7   :  { %2450 = vst [vmem:[%s3431_s8 + $0x8] sm:$0xff] %v2446_v58 }

</bundles_post_ra>
